<compile_context>
chip_gen: v5e
topology: v5e:2x2
jax: 0.10.0
libtpu: 0.0.40
codegen_flags: <defaults>
</compile_context>

<pallas_src>
import math

import jax
import jax.numpy as jnp
from jax.experimental import pallas as pl
from jax.experimental.pallas import tpu as pltpu


def _make_mha_kernel(h, d_k, scale, with_attn):
    def kernel(q_ref, k_ref, v_ref, m_ref, o_ref, *attn_refs):
        # q_ref/k_ref/v_ref/o_ref: (TB, L, d_model) block of sequences
        # m_ref:                   (TB, 1, L)       key-padding mask block
        # attn_refs (optional):    ((TB, h, L, L),)
        tb, L, d_model = q_ref.shape

        for b in range(tb):  # static unroll over the sequences in this block
            # (L, d_model) -> (L, h, d_k): head split as a view of the lane axis
            qb = q_ref[b].reshape(L, h, d_k)
            kb = k_ref[b].reshape(L, h, d_k)
            vb = v_ref[b].reshape(L, h, d_k)

            # One batched matmul over all heads:
            #   s[hd, i, j] = sum_d qb[i, hd, d] * kb[j, hd, d]
            s = jax.lax.dot_general(
                qb, kb, (((2,), (2,)), ((1,), (1,))),
                preferred_element_type=jnp.float32)          # (h, L, L) f32
            s = s * jnp.float32(scale)                       # scale in f32

            # masked_fill(mask == 0, 1e-9) — faithful to the original module.
            pad = (m_ref[b] == 0).reshape(1, 1, L)
            s = jnp.where(pad, jnp.float32(1e-9), s)

            # numerically stable softmax over the key axis
            s_max = jnp.max(s, axis=-1, keepdims=True)
            e = jnp.exp(s - s_max)
            denom = jnp.sum(e, axis=-1, keepdims=True)
            p = e * pl.reciprocal(denom, approx=False)       # (h, L, L)

            if with_attn:
                attn_refs[0][b] = p.astype(attn_refs[0].dtype)

            # One batched matmul over all heads:
            #   ob[hd, i, d] = sum_j p[hd, i, j] * vb[j, hd, d]
            ob = jax.lax.dot_general(
                p.astype(vb.dtype), vb, (((2,), (0,)), ((0,), (1,))),
                preferred_element_type=jnp.float32)          # (h, L, d_k)

            # single contiguous (L, d_model) store for this sequence
            o_ref[b] = (
                jnp.transpose(ob, (1, 0, 2))
                .reshape(L, h * d_k)
                .astype(o_ref.dtype)
            )

    return kernel


def multi_headed_attention(query, key, value, mask, *, h, return_attn=False,
                           batch_block=8):
    """query/key/value: [B, L, d_model]; mask: [B, L] (1 = keep, 0 = pad).

    Returns (out [B, L, d_model], attn [B, h, L, L] or None).
    """
    B, L, d_model = query.shape
    assert d_model % h == 0
    d_k = d_model // h
    scale = 1.0 / math.sqrt(d_k)

    # batch several sequences per grid step (largest divisor of B <= batch_block)
    tb = min(batch_block, B)
    while B % tb != 0:
        tb -= 1

    # mask.unsqueeze(1) semantics; tiny, broadcast over query rows in-kernel.
    mask3 = mask.reshape(B, 1, L).astype(jnp.float32)

    qkv_spec = pl.BlockSpec((tb, L, d_model), lambda b: (b, 0, 0))
    mask_spec = pl.BlockSpec((tb, 1, L), lambda b: (b, 0, 0))
    out_spec = pl.BlockSpec((tb, L, d_model), lambda b: (b, 0, 0))

    out_shapes = [jax.ShapeDtypeStruct((B, L, d_model), query.dtype)]
    out_specs = [out_spec]
    if return_attn:
        out_shapes.append(jax.ShapeDtypeStruct((B, h, L, L), jnp.float32))
        out_specs.append(pl.BlockSpec((tb, h, L, L), lambda b: (b, 0, 0, 0)))

    itemsize = jnp.dtype(query.dtype).itemsize

    # Explicit VMEM budget: 4 double-buffered (tb,L,d_model) blocks + mask +
    # in-kernel (h,L,L) f32 intermediates (+ double-buffered attn block).
    block_bytes = tb * L * d_model * itemsize
    vmem_need = 4 * 2 * block_bytes + 2 * tb * L * 4 + 4 * h * L * L * 4
    if return_attn:
        vmem_need += 2 * tb * h * L * L * 4
    vmem_limit = int(min(max(2 * vmem_need, 32 * 1024 * 1024),
                         64 * 1024 * 1024))

    bytes_accessed = 4 * B * L * d_model * itemsize + mask3.size * 4
    if return_attn:
        bytes_accessed += B * h * L * L * 4
    cost = pl.CostEstimate(
        flops=4 * B * h * L * L * d_k,
        transcendentals=B * h * L * L,
        bytes_accessed=bytes_accessed,
    )

    results = pl.pallas_call(
        _make_mha_kernel(h, d_k, scale, return_attn),
        out_shape=tuple(out_shapes),
        grid_spec=pltpu.PrefetchScalarGridSpec(
            num_scalar_prefetch=0,
            grid=(B // tb,),
            in_specs=[qkv_spec, qkv_spec, qkv_spec, mask_spec],
            out_specs=out_specs,
        ),
        compiler_params=pltpu.CompilerParams(
            dimension_semantics=("parallel",),
            vmem_limit_bytes=vmem_limit,
        ),
        cost_estimate=cost,
    )(query, key, value, mask3)

    if return_attn:
        return results[0], results[1]
    return results[0], None


def _reference(query, key, value, mask, *, h):
    B, L, d_model = query.shape
    d_k = d_model // h
    split = lambda x: jnp.transpose(x.reshape(B, L, h, d_k), (0, 2, 1, 3))
    q, k, v = split(query), split(key), split(value)
    scores = jnp.einsum("bhqd,bhkd->bhqk", q, k) / math.sqrt(d_k)
    m = mask.reshape(B, 1, 1, L)
    scores = jnp.where(m == 0, 1e-9, scores)
    p = jax.nn.softmax(scores, axis=-1)
    x = jnp.einsum("bhqk,bhkd->bhqd", p, v)
    return jnp.transpose(x, (0, 2, 1, 3)).reshape(B, L, d_model), p


if __name__ == "__main__":
    B, L, d_model, h = 2, 8, 32, 4

    key0 = jax.random.PRNGKey(0)
    kq, kk, kv = jax.random.split(key0, 3)
    query = jax.random.normal(kq, (B, L, d_model), dtype=jnp.float32)
    keyt = jax.random.normal(kk, (B, L, d_model), dtype=jnp.float32)
    value = jax.random.normal(kv, (B, L, d_model), dtype=jnp.float32)
    # mask: last two positions of each sequence are padding
    mask = jnp.concatenate(
        [jnp.ones((B, L - 2), jnp.float32), jnp.zeros((B, 2), jnp.float32)], axis=-1
    )

    ref_out, ref_attn = _reference(query, keyt, value, mask, h=h)

    # default path: output only (no attention-probability HBM writeback)
    out, _ = multi_headed_attention(query, keyt, value, mask, h=h)
    jax.block_until_ready(out)
    assert out.shape == (B, L, d_model)
    assert jnp.allclose(out, ref_out, atol=2e-3, rtol=2e-3)

    # optional path: also materialize the attention probabilities
    out2, attn = multi_headed_attention(query, keyt, value, mask, h=h, return_attn=True)
    jax.block_until_ready(out2)
    assert attn.shape == (B, h, L, L)
    assert jnp.allclose(out2, ref_out, atol=2e-3, rtol=2e-3)
    assert jnp.allclose(attn, ref_attn, atol=2e-3, rtol=2e-3)

    print("KERNEL_OK")
</pallas_src>

<mosaic_0001>
module attributes {stable_mosaic.version = 11 : i64} {
  func.func @kernel(%arg0: i32, %arg1: memref<2x8x32xf32, #tpu.memory_space<vmem>>, %arg2: memref<2x8x32xf32, #tpu.memory_space<vmem>>, %arg3: memref<2x8x32xf32, #tpu.memory_space<vmem>>, %arg4: memref<2x1x8xf32, #tpu.memory_space<vmem>>, %arg5: memref<2x8x32xf32, #tpu.memory_space<vmem>>) attributes {dimension_semantics = [#tpu.dimension_semantics<parallel>], iteration_bounds = array<i64: 1>, scalar_prefetch = 0 : i64, scratch_operands = 0 : i64, tpu.core_type = #tpu.core_type<tc>, window_params = [{transform_indices = @transform_0, window_bounds = array<i64: 2, 8, 32>}, {transform_indices = @transform_1, window_bounds = array<i64: 2, 8, 32>}, {transform_indices = @transform_2, window_bounds = array<i64: 2, 8, 32>}, {transform_indices = @transform_3, window_bounds = array<i64: 2, 1, 8>}, {transform_indices = @transform_4, window_bounds = array<i64: 2, 8, 32>}]} {
    %c0 = arith.constant 0 : index
    %c0_0 = arith.constant 0 : index
    %c0_1 = arith.constant 0 : index
    %0 = vector.load %arg1[%c0, %c0_0, %c0_1] : memref<2x8x32xf32, #tpu.memory_space<vmem>>, vector<1x8x32xf32>
    %1 = vector.shape_cast %0 : vector<1x8x32xf32> to vector<8x32xf32>
    %2 = vector.shape_cast %1 : vector<8x32xf32> to vector<8x4x8xf32>
    %c0_2 = arith.constant 0 : index
    %c0_3 = arith.constant 0 : index
    %c0_4 = arith.constant 0 : index
    %3 = vector.load %arg2[%c0_2, %c0_3, %c0_4] : memref<2x8x32xf32, #tpu.memory_space<vmem>>, vector<1x8x32xf32>
    %4 = vector.shape_cast %3 : vector<1x8x32xf32> to vector<8x32xf32>
    %5 = vector.shape_cast %4 : vector<8x32xf32> to vector<8x4x8xf32>
    %c0_5 = arith.constant 0 : index
    %c0_6 = arith.constant 0 : index
    %c0_7 = arith.constant 0 : index
    %6 = vector.load %arg3[%c0_5, %c0_6, %c0_7] : memref<2x8x32xf32, #tpu.memory_space<vmem>>, vector<1x8x32xf32>
    %7 = vector.shape_cast %6 : vector<1x8x32xf32> to vector<8x32xf32>
    %8 = vector.shape_cast %7 : vector<8x32xf32> to vector<8x4x8xf32>
    %cst = arith.constant dense<0.000000e+00> : vector<4x8x8xf32>
    %9 = tpu.matmul %2, %5, %cst {dimension_numbers = #tpu.dot_dimension_numbers<[2], [2], [0], [0], [0, 1, 0, 0, 1, 0], [1], [1]>} : vector<8x4x8xf32>, vector<8x4x8xf32>, vector<4x8x8xf32> -> vector<4x8x8xf32>
    %cst_8 = arith.constant 0.353553385 : f32
    %10 = vector.broadcast %cst_8 : f32 to vector<4x8x8xf32>
    %11 = arith.mulf %9, %10 : vector<4x8x8xf32>
    %c0_9 = arith.constant 0 : index
    %c0_10 = arith.constant 0 : index
    %c0_11 = arith.constant 0 : index
    %12 = vector.load %arg4[%c0_9, %c0_10, %c0_11] : memref<2x1x8xf32, #tpu.memory_space<vmem>>, vector<1x1x8xf32>
    %13 = vector.shape_cast %12 : vector<1x1x8xf32> to vector<1x8xf32>
    %cst_12 = arith.constant 0.000000e+00 : f32
    %14 = vector.broadcast %cst_12 : f32 to vector<1x8xf32>
    %15 = arith.cmpf oeq, %13, %14 : vector<1x8xf32>
    %16 = vector.shape_cast %15 : vector<1x8xi1> to vector<1x1x8xi1>
    %cst_13 = arith.constant 9.99999971E-10 : f32
    %17 = vector.shape_cast %16 : vector<1x1x8xi1> to vector<1x1x8xi1>
    %18 = vector.broadcast %17 : vector<1x1x8xi1> to vector<4x8x8xi1>
    %19 = vector.broadcast %cst_13 : f32 to vector<4x8x8xf32>
    %20 = arith.select %18, %19, %11 : vector<4x8x8xi1>, vector<4x8x8xf32>
    %cst_14 = arith.constant dense<0xFF800000> : vector<4x8xf32>
    %21 = vector.multi_reduction <maximumf>, %20, %cst_14 [2] : vector<4x8x8xf32> to vector<4x8xf32>
    %22 = vector.shape_cast %21 : vector<4x8xf32> to vector<4x8x1xf32>
    %23 = vector.broadcast %22 : vector<4x8x1xf32> to vector<4x8x8xf32>
    %24 = arith.subf %20, %23 : vector<4x8x8xf32>
    %25 = math.exp %24 : vector<4x8x8xf32>
    %cst_15 = arith.constant dense<0.000000e+00> : vector<4x8xf32>
    %26 = vector.multi_reduction <add>, %25, %cst_15 [2] : vector<4x8x8xf32> to vector<4x8xf32>
    %27 = vector.shape_cast %26 : vector<4x8xf32> to vector<4x8x1xf32>
    %28 = tpu.reciprocal %27 : vector<4x8x1xf32> -> vector<4x8x1xf32>
    %29 = vector.broadcast %28 : vector<4x8x1xf32> to vector<4x8x8xf32>
    %30 = arith.mulf %25, %29 : vector<4x8x8xf32>
    %cst_16 = arith.constant dense<0.000000e+00> : vector<4x8x8xf32>
    %31 = tpu.matmul %30, %8, %cst_16 {dimension_numbers = #tpu.dot_dimension_numbers<[2], [0], [1], [2], [0, 0, 0, 1, 1, 2], [0], [1]>} : vector<4x8x8xf32>, vector<8x4x8xf32>, vector<4x8x8xf32> -> vector<4x8x8xf32>
    %32 = tpu.transpose %31, [1, 0, 2] : vector<4x8x8xf32> -> vector<8x4x8xf32>
    %33 = vector.shape_cast %32 : vector<8x4x8xf32> to vector<8x32xf32>
    %c0_17 = arith.constant 0 : index
    %c0_18 = arith.constant 0 : index
    %c0_19 = arith.constant 0 : index
    %34 = vector.load %arg5[%c0_17, %c0_18, %c0_19] : memref<2x8x32xf32, #tpu.memory_space<vmem>>, vector<1x8x32xf32>
    %35 = vector.shape_cast %34 : vector<1x8x32xf32> to vector<8x32xf32>
    %36 = vector.shape_cast %33 : vector<8x32xf32> to vector<1x8x32xf32>
    tpu.vector_store %arg5[%c0_17, %c0_18, %c0_19], %36 {strides = array<i32>} : memref<2x8x32xf32, #tpu.memory_space<vmem>>, vector<1x8x32xf32>,
    %c1 = arith.constant 1 : index
    %c0_20 = arith.constant 0 : index
    %c0_21 = arith.constant 0 : index
    %37 = vector.load %arg1[%c1, %c0_20, %c0_21] : memref<2x8x32xf32, #tpu.memory_space<vmem>>, vector<1x8x32xf32>
    %38 = vector.shape_cast %37 : vector<1x8x32xf32> to vector<8x32xf32>
    %39 = vector.shape_cast %38 : vector<8x32xf32> to vector<8x4x8xf32>
    %c1_22 = arith.constant 1 : index
    %c0_23 = arith.constant 0 : index
    %c0_24 = arith.constant 0 : index
    %40 = vector.load %arg2[%c1_22, %c0_23, %c0_24] : memref<2x8x32xf32, #tpu.memory_space<vmem>>, vector<1x8x32xf32>
    %41 = vector.shape_cast %40 : vector<1x8x32xf32> to vector<8x32xf32>
    %42 = vector.shape_cast %41 : vector<8x32xf32> to vector<8x4x8xf32>
    %c1_25 = arith.constant 1 : index
    %c0_26 = arith.constant 0 : index
    %c0_27 = arith.constant 0 : index
    %43 = vector.load %arg3[%c1_25, %c0_26, %c0_27] : memref<2x8x32xf32, #tpu.memory_space<vmem>>, vector<1x8x32xf32>
    %44 = vector.shape_cast %43 : vector<1x8x32xf32> to vector<8x32xf32>
    %45 = vector.shape_cast %44 : vector<8x32xf32> to vector<8x4x8xf32>
    %cst_28 = arith.constant dense<0.000000e+00> : vector<4x8x8xf32>
    %46 = tpu.matmul %39, %42, %cst_28 {dimension_numbers = #tpu.dot_dimension_numbers<[2], [2], [0], [0], [0, 1, 0, 0, 1, 0], [1], [1]>} : vector<8x4x8xf32>, vector<8x4x8xf32>, vector<4x8x8xf32> -> vector<4x8x8xf32>
    %cst_29 = arith.constant 0.353553385 : f32
    %47 = vector.broadcast %cst_29 : f32 to vector<4x8x8xf32>
    %48 = arith.mulf %46, %47 : vector<4x8x8xf32>
    %c1_30 = arith.constant 1 : index
    %c0_31 = arith.constant 0 : index
    %c0_32 = arith.constant 0 : index
    %49 = vector.load %arg4[%c1_30, %c0_31, %c0_32] : memref<2x1x8xf32, #tpu.memory_space<vmem>>, vector<1x1x8xf32>
    %50 = vector.shape_cast %49 : vector<1x1x8xf32> to vector<1x8xf32>
    %cst_33 = arith.constant 0.000000e+00 : f32
    %51 = vector.broadcast %cst_33 : f32 to vector<1x8xf32>
    %52 = arith.cmpf oeq, %50, %51 : vector<1x8xf32>
    %53 = vector.shape_cast %52 : vector<1x8xi1> to vector<1x1x8xi1>
    %cst_34 = arith.constant 9.99999971E-10 : f32
    %54 = vector.shape_cast %53 : vector<1x1x8xi1> to vector<1x1x8xi1>
    %55 = vector.broadcast %54 : vector<1x1x8xi1> to vector<4x8x8xi1>
    %56 = vector.broadcast %cst_34 : f32 to vector<4x8x8xf32>
    %57 = arith.select %55, %56, %48 : vector<4x8x8xi1>, vector<4x8x8xf32>
    %cst_35 = arith.constant dense<0xFF800000> : vector<4x8xf32>
    %58 = vector.multi_reduction <maximumf>, %57, %cst_35 [2] : vector<4x8x8xf32> to vector<4x8xf32>
    %59 = vector.shape_cast %58 : vector<4x8xf32> to vector<4x8x1xf32>
    %60 = vector.broadcast %59 : vector<4x8x1xf32> to vector<4x8x8xf32>
    %61 = arith.subf %57, %60 : vector<4x8x8xf32>
    %62 = math.exp %61 : vector<4x8x8xf32>
    %cst_36 = arith.constant dense<0.000000e+00> : vector<4x8xf32>
    %63 = vector.multi_reduction <add>, %62, %cst_36 [2] : vector<4x8x8xf32> to vector<4x8xf32>
    %64 = vector.shape_cast %63 : vector<4x8xf32> to vector<4x8x1xf32>
    %65 = tpu.reciprocal %64 : vector<4x8x1xf32> -> vector<4x8x1xf32>
    %66 = vector.broadcast %65 : vector<4x8x1xf32> to vector<4x8x8xf32>
    %67 = arith.mulf %62, %66 : vector<4x8x8xf32>
    %cst_37 = arith.constant dense<0.000000e+00> : vector<4x8x8xf32>
    %68 = tpu.matmul %67, %45, %cst_37 {dimension_numbers = #tpu.dot_dimension_numbers<[2], [0], [1], [2], [0, 0, 0, 1, 1, 2], [0], [1]>} : vector<4x8x8xf32>, vector<8x4x8xf32>, vector<4x8x8xf32> -> vector<4x8x8xf32>
    %69 = tpu.transpose %68, [1, 0, 2] : vector<4x8x8xf32> -> vector<8x4x8xf32>
    %70 = vector.shape_cast %69 : vector<8x4x8xf32> to vector<8x32xf32>
    %c1_38 = arith.constant 1 : index
    %c0_39 = arith.constant 0 : index
    %c0_40 = arith.constant 0 : index
    %71 = vector.load %arg5[%c1_38, %c0_39, %c0_40] : memref<2x8x32xf32, #tpu.memory_space<vmem>>, vector<1x8x32xf32>
    %72 = vector.shape_cast %71 : vector<1x8x32xf32> to vector<8x32xf32>
    %73 = vector.shape_cast %70 : vector<8x32xf32> to vector<1x8x32xf32>
    tpu.vector_store %arg5[%c1_38, %c0_39, %c0_40], %73 {strides = array<i32>} : memref<2x8x32xf32, #tpu.memory_space<vmem>>, vector<1x8x32xf32>,
    return
  }
  func.func @transform_0(%arg0: i32) -> (i32, i32, i32) {
    %c0_i32 = arith.constant 0 : i32
    %c0_i32_0 = arith.constant 0 : i32
    %c0_i32_1 = arith.constant 0 : i32
    return %arg0, %c0_i32, %c0_i32_0 : i32, i32, i32
  }
  func.func @transform_1(%arg0: i32) -> (i32, i32, i32) {
    %c0_i32 = arith.constant 0 : i32
    %c0_i32_0 = arith.constant 0 : i32
    %c0_i32_1 = arith.constant 0 : i32
    return %arg0, %c0_i32, %c0_i32_0 : i32, i32, i32
  }
  func.func @transform_2(%arg0: i32) -> (i32, i32, i32) {
    %c0_i32 = arith.constant 0 : i32
    %c0_i32_0 = arith.constant 0 : i32
    %c0_i32_1 = arith.constant 0 : i32
    return %arg0, %c0_i32, %c0_i32_0 : i32, i32, i32
  }
  func.func @transform_3(%arg0: i32) -> (i32, i32, i32) {
    %c0_i32 = arith.constant 0 : i32
    %c0_i32_0 = arith.constant 0 : i32
    %c0_i32_1 = arith.constant 0 : i32
    return %arg0, %c0_i32, %c0_i32_0 : i32, i32, i32
  }
  func.func @transform_4(%arg0: i32) -> (i32, i32, i32) {
    %c0_i32 = arith.constant 0 : i32
    %c0_i32_0 = arith.constant 0 : i32
    %c0_i32_1 = arith.constant 0 : i32
    return %arg0, %c0_i32, %c0_i32_0 : i32, i32, i32
  }
}

</mosaic_0001>

<bundles_post_ra>
// kernel: tpu_custom_call.1
= control target key start
LH: loop header
LB: loop body
LE: loop exit
PB: predicated region body
PF: predicated region fallthrough
CT: control target
= control target key end

     0   :  { %9 = vsyncpa [#allocation3], 0  ;;  %s3940_s0 = inlined_call_operand.hbm [shape: f32[2,8,32], index: 0, kind: input, shape index: {}]   ;;  %s3941_s1 = inlined_call_operand.hbm [shape: f32[2,8,32], index: 1, kind: input, shape index: {}]   ;;  %s3942_s2 = inlined_call_operand.hbm [shape: f32[2,8,32], index: 2, kind: input, shape index: {}]   ;;  %s3943_s3 = inlined_call_operand.vmem [shape: f32[2,1,8], index: 3, kind: input, shape index: {}]   ;;  %s3944_s4 = inlined_call_operand.hbm [shape: f32[2,8,32], index: 4, kind: output, shape index: {}]  }
   0x1   :  { %10 = vsyncpa [#allocation6], 0 }
   0x2   :  { %11 = vsyncpa [#allocation4], 0  ;;  %s29_s17 = sshll.u32 %s3941_s1, 4  ;;  %s3204_s18 = smov [#allocation5]   ;;  %s30_s17 = int_to_ptr.hbm [resolvable:$true] %s29_s17 }
   0x3   :  { %s31_s19 = sshll.u32 %s3204_s18, 4  ;;  %s16_s22 = sshll.u32 %s3940_s0, 4  ;;  %s32_s19 = int_to_ptr.vmem [resolvable:$true] %s31_s19  ;;  %s17_s22 = int_to_ptr.hbm [resolvable:$true] %s16_s22 }
   0x4   :  { %s3205_s23 = smov 128   ;;  %s3206_s24 = smov 8  }
   0x5   :  { %37 = dma.hbm_to_vmem [thread:$0]  %s30_s17, 256, %s32_s19, [#allocation6], %s3205_s23, %s3205_s23, %s3206_s24  }
   0x6   :  { %s3207_s25 = smov [#allocation2]   ;;  %s42_s1 = sshll.u32 %s3942_s2, 4  ;;  %s43_s1 = int_to_ptr.hbm [resolvable:$true] %s42_s1 }
   0x7   :  { %s18_s26 = sshll.u32 %s3207_s25, 4  ;;  %s3208_s0 = smov [#allocation7]   ;;  %s19_s26 = int_to_ptr.vmem [resolvable:$true] %s18_s26 }
   0x8   :  { %24 = dma.hbm_to_vmem [thread:$0]  %s17_s22, 256, %s19_s26, [#allocation3], %s3205_s23, %s3205_s23, %s3206_s24  }
   0x9   :  { %s44_s29 = sshll.u32 %s3208_s0, 4  ;;  %s45_s29 = int_to_ptr.vmem [resolvable:$true] %s44_s29 }
   0xa   :  { %50 = dma.hbm_to_vmem [thread:$0]  %s43_s1, 256, %s45_s29, [#allocation6], %s3205_s23, %s3205_s23, %s3206_s24  }
   0xb   :  { %3198 = dma.done.wait [#allocation3], 256  }
   0xc   :  { %3199 = vsyncadd [#allocation3], 4294967040 }
   0xd   :  { %3200 = dma.done.wait [#allocation6], 512  }
   0xe   :  { %3201 = vsyncadd [#allocation6], 4294966784  ;;  %v133_v0 = vld [vmem:[#allocation5] sm:$0xff]  ;;  %s3209_s30 = smov 120   ;;  %s3210_s2 = smov 112   ;;  %v3263_v1 = vld [vmem:[#allocation2] sm:$0xff] }
   0xf   :  { %135 = vrot.lane.b32.xlu0 %v133_v0, %s3209_s30  ;;  %138 = vrot.lane.b32.xlu1 %v133_v0, %s3210_s2  ;;  %s3211_s5 = smov 104   ;;  %v3270_v2 = vld [vmem:[#allocation7] sm:$0xff]  ;;  %v3272_v3 = vld [vmem:[#allocation5 + $0x8] sm:$0xff]  ;;  %v3212_v5 = vmov 1983009808   ;;  %v146_v9 = vrot.slane %v133_v0, 4 }
  0x10   :  { %70 = vrot.lane.b32.xlu2 %v3263_v1, %s3210_s2  ;;  %v2950_v4 = vpack.i.bf16 %v3270_v2, %v3272_v3  ;;  %v82_v6 = vunpack.c.l.s4 %v3212_v5  ;;  %vm77_vm0 = vcmask 1047556   ;;  %v3213_v20 = vmov 1934713408   ;;  %s3216_s10 = smov 24   ;;  %s3217_s11 = smov [#allocation8]  }
  0x11   :  { %v106_v21 = vunpack.c.l.s4 %v3213_v20  ;;  %vm1001_vm1 = vcmask 64512   ;;  %s2895_s12 = sshll.u32 %s3217_s11, 4  ;;  %s2897_s15 = sshll.u32 %s3944_s4, 4  ;;  %s2896_s12 = int_to_ptr.vmem [resolvable:$true] %s2895_s12  ;;  %s2898_s15 = int_to_ptr.hbm [resolvable:$true] %s2897_s15 }
  0x12   :  { %v3280_v11 = vunpack.c.0.s8 %v82_v6 }
  0x13   :  { %v3290_v28 = vunpack.c.0.s8 %v106_v21 }
  0x17   :  { %141 = vrot.lane.b32.xlu0 %v133_v0, %s3211_s5  ;;  %67 = vrot.lane.b32.xlu1 %v3263_v1, %s3209_s30 }
  0x18   :  { %73 = vrot.lane.b32.xlu2 %v3263_v1, %s3211_s5 }
  0x1f   :  { %2951 = vrot.lane.b32.xlu0 %v2950_v4, %s3209_s30 }
  0x27   :  { %2961 = vrot.lane.b32.xlu0 %v2950_v4, %s3210_s2 }
  0x6a   :  { %v3305_v50 = vpop.permute.xlu2 %70 }
  0x72   :  { %v3309_v52 = vpop.permute.xlu2 %73 }
  0x81   :  { %v136_v7 = vpop.permute.xlu0 %135  ;;  %v139_v8 = vpop.permute.xlu1 %138 }
  0x82   :  { %v144_v10 = vrot.slane %v139_v8, 4  ;;  %v147_v13 = vsel %vm77_vm0, %v139_v8, %v146_v9  ;;  %v158_v15 = vrot.slane %v136_v7, 4 }
  0x83   :  { %v155_v16 = vperm.slane %v147_v13, %v3280_v11 }
  0x84   :  { %v145_v12 = vsel %vm77_vm0, %v144_v10, %v133_v0 }
  0x85   :  { %v151_v14 = vperm.slane %v145_v12, %v3280_v11  ;;  %v182_v24 = vrot.slane %v155_v16, 4 }
  0x87   :  { %v170_v23 = vrot.slane %v151_v14, 4 }
  0x89   :  { %v142_v17 = vpop.permute.xlu0 %141  ;;  %v3313_v55 = vpop.permute.xlu1 %67 }
  0x8a   :  { %v156_v18 = vrot.slane %v142_v17, 4  ;;  %v159_v19 = vsel %vm77_vm0, %v142_v17, %v158_v15 }
  0x8b   :  { %v167_v22 = vperm.slane %v159_v19, %v3280_v11 }
  0x8c   :  { %v157_v25 = vsel %vm77_vm0, %v156_v18, %v136_v7 }
  0x8d   :  { %v163_v26 = vperm.slane %v157_v25, %v3280_v11  ;;  %v180_v27 = vrot.slane %v167_v22, 4  ;;  %v183_v33 = vsel %vm77_vm0, %v167_v22, %v182_v24 }
  0x8e   :  { %v191_v38 = vperm.slane %v183_v33, %v3290_v28 }
  0x8f   :  { %v168_v29 = vrot.slane %v163_v26, 4  ;;  %v181_v30 = vsel %vm77_vm0, %v180_v27, %v155_v16  ;;  %v171_v31 = vsel %vm77_vm0, %v163_v26, %v170_v23 }
  0x90   :  { %v187_v32 = vperm.slane %v181_v30, %v3290_v28  ;;  %v179_v35 = vperm.slane %v171_v31, %v3290_v28  ;;  %v198_v46 = vrot.slane %v191_v38, 4 }
  0x91   :  { %v169_v34 = vsel %vm77_vm0, %v168_v29, %v151_v14  ;;  %v3307_v51 = vpop.permute.xlu0 %2951 }
  0x92   :  { %v175_v36 = vperm.slane %v169_v34, %v3290_v28  ;;  %v196_v37 = vrot.slane %v187_v32, 4  ;;  %v194_v43 = vrot.slane %v179_v35, 4  ;;  %v199_v48 = vsel %vm77_vm0, 0.0, %v198_v46 }
  0x94   :  { %v2965_v39 = vpack.i.bf16 %v175_v36, %v187_v32  ;;  %v197_v40 = vsel %vm77_vm0, 0.0, %v196_v37  ;;  %v192_v41 = vrot.slane %v175_v36, 4  ;;  %v195_v47 = vsel %vm77_vm0, 0.0, %v194_v43 }
  0x95   :  { %v2943_v42 = vpack.i.bf16 %v191_v38, %v197_v40  ;;  %v2979_v49 = vpack.i.bf16 %v195_v47, %v199_v48 }
  0x96   :  { %2966 = vxpose.xlu0.b32.start.end [1/1] (short) (narrow) %v2965_v39, 8  ;;  %v193_v44 = vsel %vm77_vm0, 0.0, %v192_v41 }
  0x97   :  { %2944 = vxpose.xlu1.b32.start.end [1/1] (short) (narrow) %v2943_v42, 8  ;;  %v2972_v45 = vpack.i.bf16 %v179_v35, %v193_v44 }
  0x99   :  { %2973 = vxpose.xlu2.b32.start.end [1/1] (short) (narrow) %v2972_v45, 8  ;;  %v3311_v53 = vpop.permute.xlu0 %2961 }
  0x9e   :  { %2980 = vxpose.xlu0.b32.start.end [1/1] (short) (narrow) %v2979_v49, 8 }
  0xf1   :  { %2956 = vrot.lane.b32.xlu1 %v2950_v4, %s3211_s5 }
 0x132   :  { %v2974_v54 = vpop.trf.xlu2 }
 0x133   :  { %v2978_v56 = vunpack.i.h.bf16 %v2974_v54  ;;  %v2975_v61 = vunpack.i.l.bf16 %v2974_v54 }
 0x135   :  { %v577_v63 = vrot.slane %v2978_v56, 4  ;;  %v591_v10 = vrot.slane %v2975_v61, 4 }
 0x13a   :  { %v2967_v57 = vpop.trf.xlu0 }
 0x13b   :  { %v2971_v58 = vunpack.i.h.bf16 %v2967_v57  ;;  %v2968_v59 = vunpack.i.l.bf16 %v2967_v57  ;;  %v2945_v60 = vpop.trf.xlu1 }
 0x13c   :  { %v2949_v62 = vunpack.i.h.bf16 %v2945_v60  ;;  %v2946_v5 = vunpack.i.l.bf16 %v2945_v60 }
 0x13d   :  { %v579_v0 = vrot.slane %v2971_v58, 4  ;;  %v603_v4 = vrot.slane %v2968_v59, 4  ;;  %v578_v12 = vsel %vm77_vm0, %v577_v63, %v2971_v58 }
 0x13e   :  { %v601_v6 = vrot.slane %v2949_v62, 4  ;;  %v615_v13 = vrot.slane %v2946_v5, 4  ;;  %v584_v20 = vperm.slane %v578_v12, %v3280_v11 }
 0x13f   :  { %v580_v7 = vsel %vm77_vm0, %v2978_v56, %v579_v0  ;;  %v604_v8 = vsel %vm77_vm0, %v2949_v62, %v603_v4 }
 0x140   :  { %v602_v9 = vsel %vm77_vm0, %v601_v6, %v2968_v59  ;;  %v612_v15 = vperm.slane %v604_v8, %v3280_v11  ;;  %v588_v17 = vperm.slane %v580_v7, %v3280_v11  ;;  %v627_v40 = vrot.slane %v584_v20, 4 }
 0x141   :  { %v608_v14 = vperm.slane %v602_v9, %v3280_v11 }
 0x142   :  { %v2981_v16 = vpop.trf.xlu0  ;;  %v639_v27 = vrot.slane %v588_v17, 4  ;;  %v663_v31 = vrot.slane %v612_v15, 4 }
 0x143   :  { %v2985_v18 = vunpack.i.h.bf16 %v2981_v16  ;;  %v2982_v19 = vunpack.i.l.bf16 %v2981_v16  ;;  %v651_v32 = vrot.slane %v608_v14, 4 }
 0x145   :  { %v589_v21 = vrot.slane %v2985_v18, 4  ;;  %v592_v22 = vsel %vm77_vm0, %v2985_v18, %v591_v10  ;;  %v613_v23 = vrot.slane %v2982_v19, 4  ;;  %v616_v24 = vsel %vm77_vm0, %v2982_v19, %v615_v13 }
 0x146   :  { %v600_v25 = vperm.slane %v592_v22, %v3280_v11  ;;  %v624_v26 = vperm.slane %v616_v24, %v3280_v11  ;;  %v1560_v22 = vrot.slane %v3272_v3, 4 }
 0x147   :  { %v590_v29 = vsel %vm77_vm0, %v589_v21, %v2975_v61  ;;  %v614_v30 = vsel %vm77_vm0, %v613_v23, %v2946_v5  ;;  %v2953_v21 = vunpack.i.l.bf16 %v3307_v51  ;;  %v2963_v23 = vunpack.i.l.bf16 %v3311_v53 }
 0x148   :  { %v620_v33 = vperm.slane %v614_v30, %v3280_v11  ;;  %v661_v34 = vrot.slane %v624_v26, 4  ;;  %v637_v35 = vrot.slane %v600_v25, 4  ;;  %v640_v36 = vsel %vm77_vm0, %v600_v25, %v639_v27 }
 0x149   :  { %v648_v37 = vperm.slane %v640_v36, %v3290_v28  ;;  %v664_v38 = vsel %vm77_vm0, %v624_v26, %v663_v31  ;;  %v596_v39 = vperm.slane %v590_v29, %v3280_v11  ;;  %v1572_v25 = vrot.slane %v2953_v21, 4 }
 0x14a   :  { %v638_v41 = vsel %vm77_vm0, %v637_v35, %v588_v17  ;;  %v662_v42 = vsel %vm77_vm0, %v661_v34, %v612_v15  ;;  %v672_v43 = vperm.slane %v664_v38, %v3290_v28  ;;  %v652_v44 = vsel %vm77_vm0, %v620_v33, %v651_v32 }
 0x14b   :  { %v668_v45 = vperm.slane %v662_v42, %v3290_v28  ;;  %v687_v46 = vrot.slane %v648_v37, 4  ;;  %v628_v47 = vsel %vm77_vm0, %v596_v39, %v627_v40  ;;  %v660_v48 = vperm.slane %v652_v44, %v3290_v28 }
 0x14c   :  { %v685_v49 = vrot.slane %v672_v43, 4  ;;  %v625_v54 = vrot.slane %v596_v39, 4  ;;  %v644_v56 = vperm.slane %v638_v41, %v3290_v28  ;;  %v649_v58 = vrot.slane %v620_v33, 4 }
 0x14d   :  { %v681_v57 = vrot.slane %v668_v45, 4  ;;  %v636_v59 = vperm.slane %v628_v47, %v3290_v28  ;;  %v677_v60 = vrot.slane %v660_v48, 4  ;;  %v688_v63 = vsel %vm77_vm0, %v672_v43, %v687_v46 }
 0x14e   :  { %v626_v61 = vsel %vm77_vm0, %v625_v54, %v584_v20  ;;  %v650_v4 = vsel %vm77_vm0, %v649_v58, %v608_v14  ;;  %v686_v7 = vsel %vm77_vm0, %v685_v49, %v648_v37  ;;  %v683_v13 = vrot.slane %v644_v56, 4 }
 0x14f   :  { %v682_v62 = vsel %vm77_vm0, %v681_v57, %v644_v56  ;;  %v632_v0 = vperm.slane %v626_v61, %v3290_v28  ;;  %v678_v6 = vsel %vm77_vm0, %v677_v60, %v636_v59  ;;  %v656_v8 = vperm.slane %v650_v4, %v3290_v28 }
 0x150   :  { %v3000_v5 = vpack.i.bf16 %v688_v63, %v682_v62  ;;  %v2986_v9 = vpack.i.bf16 %v678_v6, %v686_v7  ;;  %v679_v15 = vrot.slane %v636_v59, 4  ;;  %v684_v14 = vsel %vm77_vm0, %v668_v45, %v683_v13 }
 0x151   :  { %v675_v10 = vrot.slane %v632_v0, 4  ;;  %v673_v12 = vrot.slane %v656_v8, 4  ;;  %v1558_v26 = vrot.slane %v2963_v23, 4  ;;  %v1561_v27 = vsel %vm77_vm0, %v2963_v23, %v1560_v22 }
 0x152   :  { %3001 = vxpose.xlu0.b32.start.end [1/1] (short) (narrow) %v3000_v5, 8  ;;  %2987 = vxpose.xlu2.b32.start.end [1/1] (short) (narrow) %v2986_v9, 8  ;;  %v680_v19 = vsel %vm77_vm0, %v660_v48, %v679_v15  ;;  %v1569_v32 = vperm.slane %v1561_v27, %v3280_v11  ;;  %v76_v5 = vrot.slane %v3305_v50, 4  ;;  %v79_v6 = vrot.slane %v3263_v1, 4 }
 0x153   :  { %v676_v16 = vsel %vm77_vm0, %v656_v8, %v675_v10  ;;  %v674_v17 = vsel %vm77_vm0, %v673_v12, %v632_v0  ;;  %v1559_v34 = vsel %vm77_vm0, %v1558_v26, %v3272_v3  ;;  %v2964_v7 = vunpack.i.h.bf16 %v3311_v53 }
 0x154   :  { %v3007_v18 = vpack.i.bf16 %v676_v16, %v684_v14  ;;  %v2993_v20 = vpack.i.bf16 %v680_v19, %v674_v17  ;;  %v1565_v38 = vperm.slane %v1559_v34, %v3280_v11  ;;  %v1596_v40 = vrot.slane %v1569_v32, 4 }
 0x155   :  { %v78_v8 = vsel %vm77_vm0, %v76_v5, %v3263_v1  ;;  %v89_v9 = vrot.slane %v3309_v52, 4  ;;  %v80_v12 = vsel %vm77_vm0, %v3305_v50, %v79_v6  ;;  %v91_v13 = vrot.slane %v3313_v55, 4 }
 0x156   :  { %v1584_v45 = vrot.slane %v1565_v38, 4  ;;  %v2954_v15 = vunpack.i.h.bf16 %v3307_v51  ;;  %v213_v16 = vrot.slane %v3270_v2, 4  ;;  %v84_v17 = vperm.slane %v78_v8, %v3280_v11 }
 0x157   :  { %v211_v14 = vrot.slane %v2964_v7, 4  ;;  %v90_v53 = vsel %vm77_vm0, %v89_v9, %v3313_v55  ;;  %v88_v1 = vperm.slane %v80_v12, %v3280_v11  ;;  %v92_v19 = vsel %vm77_vm0, %v3309_v52, %v91_v13 }
 0x158   :  { %v214_v50 = vsel %vm77_vm0, %v2964_v7, %v213_v16  ;;  %v96_v51 = vperm.slane %v90_v53, %v3280_v11  ;;  %v100_v55 = vperm.slane %v92_v19, %v3280_v11 }
 0x159   :  { %v212_v22 = vsel %vm77_vm0, %v211_v14, %v3270_v2 }
 0x15a   :  { %3008 = vxpose.xlu0.b32.start.end [1/1] (short) (narrow) %v3007_v18, 8  ;;  %2994 = vxpose.xlu2.b32.start.end [1/1] (short) (narrow) %v2993_v20, 8  ;;  %v225_v20 = vrot.slane %v2954_v15, 4  ;;  %v218_v52 = vperm.slane %v212_v22, %v3280_v11  ;;  %v101_v27 = vrot.slane %v96_v51, 4 }
 0x163   :  { %v2957_v24 = vpop.permute.xlu1 %2956 }
 0x164   :  { %v2958_v29 = vunpack.i.l.bf16 %v2957_v24  ;;  %v2959_v10 = vunpack.i.h.bf16 %v2957_v24  ;;  %v115_v24 = vrot.slane %v88_v1, 4 }
 0x166   :  { %v1570_v30 = vrot.slane %v2958_v29, 4  ;;  %v1573_v31 = vsel %vm77_vm0, %v2958_v29, %v1572_v25  ;;  %v223_v18 = vrot.slane %v2959_v10, 4  ;;  %v226_v23 = vsel %vm77_vm0, %v2959_v10, %v225_v20 }
 0x167   :  { %v1581_v33 = vperm.slane %v1573_v31, %v3280_v11  ;;  %v222_v25 = vperm.slane %v214_v50, %v3280_v11  ;;  %v116_v2 = vsel %vm77_vm0, %v100_v55, %v115_v24 }
 0x168   :  { %v1571_v35 = vsel %vm77_vm0, %v1570_v30, %v2953_v21  ;;  %v103_v21 = vrot.slane %v84_v17, 4  ;;  %v224_v26 = vsel %vm77_vm0, %v223_v18, %v2954_v15  ;;  %v234_v30 = vperm.slane %v226_v23, %v3280_v11 }
 0x169   :  { %v1577_v36 = vperm.slane %v1571_v35, %v3280_v11  ;;  %v1594_v37 = vrot.slane %v1581_v33, 4  ;;  %v1597_v42 = vsel %vm77_vm0, %v1581_v33, %v1596_v40  ;;  %v230_v31 = vperm.slane %v224_v26, %v3280_v11 }
 0x16a   :  { %v1605_v46 = vperm.slane %v1597_v42, %v3290_v28  ;;  %v104_v29 = vsel %vm77_vm0, %v96_v51, %v103_v21  ;;  %v249_v33 = vrot.slane %v222_v25, 4  ;;  %v237_v35 = vrot.slane %v218_v52, 4 }
 0x16b   :  { %v1582_v39 = vrot.slane %v1577_v36, 4  ;;  %v1595_v41 = vsel %vm77_vm0, %v1594_v37, %v1569_v32  ;;  %v1585_v49 = vsel %vm77_vm0, %v1577_v36, %v1584_v45  ;;  %v113_v32 = vrot.slane %v100_v55, 4 }
 0x16c   :  { %v3370_v43 = vperm.slane %v1595_v41, %v3290_v28  ;;  %v3381_v56 = vperm.slane %v1585_v49, %v3290_v28  ;;  %v1612_v57 = vrot.slane %v1605_v46, 4  ;;  %v112_v34 = vperm.slane %v104_v29, %v3290_v28 }
 0x16d   :  { %v1583_v44 = vsel %vm77_vm0, %v1582_v39, %v1565_v38  ;;  %v102_v36 = vsel %vm77_vm0, %v101_v27, %v84_v17  ;;  %v247_v37 = vrot.slane %v234_v30, 4  ;;  %v250_v38 = vsel %vm77_vm0, %v234_v30, %v249_v33 }
 0x16e   :  { %v1610_v3 = vrot.slane %v3370_v43, 4  ;;  %v3378_v54 = vperm.slane %v1583_v44, %v3290_v28  ;;  %v1608_v60 = vrot.slane %v3381_v56, 4  ;;  %v3396_v0 = vsel %vm77_vm0, 0.0, %v1612_v57 }
 0x16f   :  { %v124_v39 = vperm.slane %v116_v2, %v3290_v28  ;;  %v235_v40 = vrot.slane %v230_v31, 4  ;;  %v238_v41 = vsel %vm77_vm0, %v230_v31, %v237_v35  ;;  %v114_v42 = vsel %vm77_vm0, %v113_v32, %v88_v1 }
 0x170   :  { %v1611_v47 = vsel %vm77_vm0, 0.0, %v1610_v3  ;;  %v1606_v58 = vrot.slane %v3378_v54, 4  ;;  %v3014_v59 = vpack.i.bf16 %v3378_v54, %v3370_v43  ;;  %v3393_v63 = vsel %vm77_vm0, 0.0, %v1608_v60 }
 0x171   :  { %v3021_v48 = vpack.i.bf16 %v1605_v46, %v1611_v47  ;;  %v3035_v4 = vpack.i.bf16 %v3393_v63, %v3396_v0  ;;  %v108_v44 = vperm.slane %v102_v36, %v3290_v28  ;;  %v127_v3 = vrot.slane %v112_v34, 4 }
 0x172   :  { %v3388_v61 = vsel %vm77_vm0, 0.0, %v1606_v58  ;;  %v258_v45 = vperm.slane %v250_v38, %v3290_v28  ;;  %v246_v46 = vperm.slane %v238_v41, %v3290_v28  ;;  %v248_v47 = vsel %vm77_vm0, %v247_v37, %v222_v25 }
 0x173   :  { %3022 = vxpose.xlu0.b32.start.end [1/1] (short) (narrow) %v3021_v48, 8  ;;  %v3028_v62 = vpack.i.bf16 %v3381_v56, %v3388_v61  ;;  %v120_v48 = vperm.slane %v114_v42, %v3290_v28  ;;  %v131_v49 = vrot.slane %v124_v39, 4  ;;  %v236_v57 = vsel %vm77_vm0, %v235_v40, %v218_v52 }
 0x174   :  { %v125_v58 = vrot.slane %v108_v44, 4  ;;  %v128_v60 = vsel %vm77_vm0, 0.0, %v127_v3  ;;  %v254_v5 = vperm.slane %v248_v47, %v3290_v28  ;;  %v265_v6 = vrot.slane %v258_v45, 4 }
 0x175   :  { %v242_v7 = vperm.slane %v236_v57, %v3290_v28  ;;  %v261_v8 = vrot.slane %v246_v46, 4  ;;  %v129_v9 = vrot.slane %v120_v48, 4  ;;  %v132_v10 = vsel %vm77_vm0, 0.0, %v131_v49 }
 0x176   :  { %v267_v12 = vsel %vm77_vm0, %v127_v3, %v108_v44  ;;  %v272_v15 = vrot.slane %v128_v60, 4  ;;  %v278_v16 = vsel %vm77_vm0, %v131_v49, %v120_v48  ;;  %v126_v17 = vsel %vm77_vm0, 0.0, %v125_v58 }
 0x177   :  { %v263_v14 = vrot.slane %v254_v5, 4  ;;  %v266_v53 = vsel %vm77_vm0, 0.0, %v265_v6  ;;  %v283_v1 = vrot.slane %v132_v10, 4  ;;  %v259_v18 = vrot.slane %v242_v7, 4 }
 0x178   :  { %v262_v19 = vsel %vm77_vm0, 0.0, %v261_v8  ;;  %v130_v20 = vsel %vm77_vm0, 0.0, %v129_v9  ;;  %v271_v50 = vperm.slane %v267_v12, %v3280_v11  ;;  %v282_v21 = vperm.slane %v278_v16, %v3280_v11 }
 0x179   :  { %v1219_v51 = vrot.slane %v266_v53, 4  ;;  %v273_v22 = vsel %vm77_vm0, %v272_v15, %v126_v17  ;;  %v1203_v23 = vsel %vm77_vm0, %v261_v8, %v242_v7  ;;  %v1214_v24 = vsel %vm77_vm0, %v265_v6, %v254_v5 }
 0x17a   :  { %v264_v26 = vsel %vm77_vm0, 0.0, %v263_v14  ;;  %v1208_v52 = vrot.slane %v262_v19, 4  ;;  %v284_v27 = vsel %vm77_vm0, %v283_v1, %v130_v20  ;;  %v260_v29 = vsel %vm77_vm0, 0.0, %v259_v18 }
 0x17b   :  { %v277_v31 = vperm.slane %v273_v22, %v3280_v11  ;;  %v291_v32 = vrot.slane %v271_v50, 4  ;;  %v303_v2 = vrot.slane %v282_v21, 4  ;;  %v1207_v33 = vperm.slane %v1203_v23, %v3280_v11 }
 0x17c   :  { %v1218_v34 = vperm.slane %v1214_v24, %v3280_v11  ;;  %v1220_v35 = vsel %vm77_vm0, %v1219_v51, %v264_v26  ;;  %v288_v39 = vperm.slane %v284_v27, %v3280_v11  ;;  %v1209_v40 = vsel %vm77_vm0, %v1208_v52, %v260_v29 }
 0x17d   :  { %v292_v44 = vsel %vm77_vm0, %v277_v31, %v291_v32  ;;  %v1224_v45 = vperm.slane %v1220_v35, %v3280_v11  ;;  %v289_v46 = vrot.slane %v277_v31, 4  ;;  %v1213_v48 = vperm.slane %v1209_v40, %v3280_v11 }
 0x17e   :  { %v304_v3 = vsel %vm77_vm0, %v288_v39, %v303_v2  ;;  %v1227_v49 = vrot.slane %v1207_v33, 4  ;;  %v1239_v57 = vrot.slane %v1218_v34, 4  ;;  %v300_v6 = vperm.slane %v292_v44, %v3290_v28 }
 0x17f   :  { %v312_v7 = vperm.slane %v304_v3, %v3290_v28  ;;  %v290_v8 = vsel %vm77_vm0, %v289_v46, %v271_v50  ;;  %v301_v9 = vrot.slane %v288_v39, 4  ;;  %v1237_v15 = vrot.slane %v1224_v45, 4 }
 0x180   :  { %v1228_v12 = vsel %vm77_vm0, %v1213_v48, %v1227_v49  ;;  %v1225_v1 = vrot.slane %v1213_v48, 4  ;;  %v296_v50 = vperm.slane %v290_v8, %v3290_v28 }
 0x181   :  { %v302_v51 = vsel %vm77_vm0, %v301_v9, %v282_v21  ;;  %v1236_v24 = vperm.slane %v1228_v12, %v3290_v28  ;;  %v317_v29 = vrot.slane %v312_v7, 4 }
 0x182   :  { %v308_v31 = vperm.slane %v302_v51, %v3290_v28  ;;  %v1226_v21 = vsel %vm77_vm0, %v1225_v1, %v1207_v33  ;;  %v315_v49 = vrot.slane %v296_v50, 4  ;;  %v3214_v1 = vmov 0  }
 0x183   :  { %v1255_v40 = vrot.slane %v1236_v24, 4  ;;  %v1232_v33 = vperm.slane %v1226_v21, %v3290_v28  ;;  %v318_v8 = vsel %vm77_vm0, %v317_v29, %v300_v6 }
 0x184   :  { %v313_v48 = vrot.slane %v308_v31, 4 }
 0x185   :  { %v1251_v12 = vrot.slane %v1232_v33, 4 }
 0x1eb   :  { %v2988_v13 = vpop.trf.xlu2 }
 0x1ec   :  { %v2992_v55 = vunpack.i.h.bf16 %v2988_v13  ;;  %v2989_v25 = vunpack.i.l.bf16 %v2988_v13  ;;  %v1240_v13 = vsel %vm77_vm0, %v1224_v45, %v1239_v57 }
 0x1ed   :  { %v1248_v20 = vperm.slane %v1240_v13, %v3290_v28 }
 0x1ee   :  { %v945_v36 = vrot.slane %v2992_v55, 4  ;;  %v957_v37 = vrot.slane %v2989_v25, 4  ;;  %v1238_v55 = vsel %vm77_vm0, %v1237_v15, %v1218_v34 }
 0x1ef   :  { %v1244_v39 = vperm.slane %v1238_v55, %v3290_v28 }
 0x1f3   :  { %v2995_v30 = vpop.trf.xlu2 }
 0x1f4   :  { %v2996_v42 = vunpack.i.l.bf16 %v2995_v30  ;;  %v2999_v47 = vunpack.i.h.bf16 %v2995_v30  ;;  %v319_v30 = vrot.slane %v300_v6, 4  ;;  %v314_v6 = vsel %vm77_vm0, %v313_v48, %v296_v50 }
 0x1f6   :  { %v3002_v38 = vpop.trf.xlu0  ;;  %v946_v5 = vsel %vm77_vm0, %v945_v36, %v2996_v42  ;;  %v951_v10 = vrot.slane %v2999_v47, 4  ;;  %v320_v47 = vsel %vm77_vm0, %v312_v7, %v319_v30  ;;  %v1256_v7 = vsel %vm77_vm0, %v1248_v20, %v1255_v40  ;;  %v3543_v40 = vld [vmem:[#allocation2 + $0x8] sm:$0xff] }
 0x1f7   :  { %v3003_v41 = vunpack.i.l.bf16 %v3002_v38  ;;  %v3006_v58 = vunpack.i.h.bf16 %v3002_v38  ;;  %v950_v14 = vperm.slane %v946_v5, %v3280_v11  ;;  %v1253_v38 = vrot.slane %v1248_v20, 4 }
 0x1f9   :  { %v958_v60 = vsel %vm77_vm0, %v957_v37, %v3003_v41  ;;  %v963_v16 = vrot.slane %v3006_v58, 4  ;;  %v971_v52 = vrot.slane %v950_v14, 4  ;;  %v1254_v9 = vsel %vm77_vm0, %v1253_v38, %v1236_v24 }
 0x1fa   :  { %v962_v17 = vperm.slane %v958_v60, %v3280_v11 }
 0x1fc   :  { %v983_v27 = vrot.slane %v962_v17, 4 }
 0x1fe   :  { %v3009_v53 = vpop.trf.xlu0 }
 0x1ff   :  { %v3013_v18 = vunpack.i.h.bf16 %v3009_v53  ;;  %v3010_v19 = vunpack.i.l.bf16 %v3009_v53  ;;  %v1098_v53 = vld [vmem:[%s3943_s3] sm:$0x1] }
 0x200   :  { %vm1099_vm2 = vcmp.eq.f32.partialorder %v1098_v53, 0.0 }
 0x201   :  { %v952_v22 = vsel %vm77_vm0, %v951_v10, %v3013_v18  ;;  %v964_v23 = vsel %vm77_vm0, %v963_v16, %v3010_v19  ;;  %v1249_v10 = vrot.slane %v1244_v39, 4  ;;  %v316_v16 = vsel %vm77_vm0, %v308_v31, %v315_v49 }
 0x202   :  { %v968_v25 = vperm.slane %v964_v23, %v3280_v11  ;;  %v956_v26 = vperm.slane %v952_v22, %v3280_v11  ;;  %v1100_v18 = vsel %vm1099_vm2, 1, %v3214_v1 }
 0x203   :  { %v1101_v19 = vperm.slane %v1100_v18, 0 }
 0x204   :  { %v972_v32 = vsel %vm77_vm0, %v956_v26, %v971_v52  ;;  %v984_v2 = vsel %vm77_vm0, %v968_v25, %v983_v27  ;;  %v969_v35 = vrot.slane %v956_v26, 4  ;;  %v981_v36 = vrot.slane %v968_v25, 4 }
 0x205   :  { %v980_v34 = vperm.slane %v972_v32, %v3290_v28  ;;  %v992_v37 = vperm.slane %v984_v2, %v3290_v28  ;;  %vm3520_vm3 = vcmp.eq.s32.totalorder %v1101_v19, 1 }
 0x206   :  { %v970_v41 = vsel %vm77_vm0, %v969_v35, %v950_v14  ;;  %v982_v42 = vsel %vm77_vm0, %v981_v36, %v962_v17  ;;  %v1250_v17 = vsel %vm77_vm0, %v1249_v10, %v1232_v33  ;;  %v1252_v14 = vsel %vm77_vm0, %v1244_v39, %v1251_v12 }
 0x207   :  { %v997_v44 = vrot.slane %v992_v37, 4  ;;  %v999_v3 = vrot.slane %v980_v34, 4  ;;  %v976_v45 = vperm.slane %v970_v41, %v3290_v28  ;;  %v988_v46 = vperm.slane %v982_v42, %v3290_v28 }
 0x209   :  { %v998_v57 = vsel %vm77_vm0, %v997_v44, %v980_v34  ;;  %v1000_v58 = vsel %vm77_vm0, %v992_v37, %v999_v3  ;;  %v993_v60 = vrot.slane %v988_v46, 4  ;;  %v995_v5 = vrot.slane %v976_v45, 4 }
 0x20a   :  { %1066 = vmatpush.msra.mxu2 %v998_v57  ;;  %1089 = vmatpush.msra.mxu3 %v1000_v58 }
 0x20b   :  { %2913 = vmatmul.msk.f32.vlgmr.msra.gmra.mxu2 %vm1001_vm1, %v318_v8  ;;  %2914 = vmatmul.msk.f32.vlgmr.msra.gmra.mxu3 %vm1001_vm1, %v320_v47  ;;  %v994_v13 = vsel %vm77_vm0, %v993_v60, %v976_v45  ;;  %v996_v15 = vsel %vm77_vm0, %v988_v46, %v995_v5 }
 0x20c   :  { %1321 = vmatpush.msrb.mxu2 %v1254_v9  ;;  %1344 = vmatpush.msrb.mxu3 %v1256_v7 }
 0x20d   :  { %1020 = vmatpush.msra.mxu0 %v994_v13  ;;  %1043 = vmatpush.msra.mxu1 %v996_v15 }
 0x20e   :  { %2911 = vmatmul.msk.f32.vlgmr.msra.gmra.mxu0 %vm1001_vm1, %v314_v6  ;;  %2912 = vmatmul.msk.f32.vlgmr.msra.gmra.mxu1 %vm1001_vm1, %v316_v16 }
 0x20f   :  { %1275 = vmatpush.msrb.mxu0 %v1250_v17  ;;  %1298 = vmatpush.msrb.mxu1 %v1252_v14 }
 0x28b   :  { %v1022_v20 = vpop.f32.mrf.mxu0  ;;  %v1045_v26 = vpop.f32.mrf.mxu1 }
 0x28c   :  { %v1094_v51 = vmul.f32 0.35355338, %v1022_v20  ;;  %v1095_v30 = vmul.f32 0.35355338, %v1045_v26 }
 0x28e   :  { %v1068_v22 = vpop.f32.mrf.mxu2  ;;  %v1091_v23 = vpop.f32.mrf.mxu3  ;;  %v1103_v24 = vsel %vm3520_vm3, 1e-09, %v1094_v51  ;;  %v1104_v32 = vsel %vm3520_vm3, 1e-09, %v1095_v30 }
 0x28f   :  { %v1096_v55 = vmul.f32 0.35355338, %v1068_v22  ;;  %v1107_v25 = vsel %vm1001_vm1, %v1103_v24, -inf  ;;  %v1097_v52 = vmul.f32 0.35355338, %v1091_v23  ;;  %v1110_v2 = vsel %vm1001_vm1, %v1104_v32, -inf }
 0x290   :  { %1108 = vmax.xlane.f32.xlu2 %v1107_v25  ;;  %v1492_v22 = vrot.slane %v3543_v40, 4 }
 0x291   :  { %v1105_v27 = vsel %vm3520_vm3, 1e-09, %v1096_v55  ;;  %v1106_v31 = vsel %vm3520_vm3, 1e-09, %v1097_v52 }
 0x292   :  { %v1113_v29 = vsel %vm1001_vm1, %v1105_v27, -inf  ;;  %v1116_v21 = vsel %vm1001_vm1, %v1106_v31, -inf }
 0x293   :  { %1114 = vmax.xlane.f32.xlu1 %v1113_v29 }
 0x298   :  { %1117 = vmax.xlane.f32.xlu2 %v1116_v21 }
 0x29b   :  { %1111 = vmax.xlane.f32.xlu1 %v1110_v2 }
 0x2c1   :  { %3029 = vxpose.xlu2.b32.start.end [1/1] (short) (narrow) %v3028_v62, 8 }
 0x2d5   :  { %3015 = vxpose.xlu1.b32.start.end [1/1] (short) (narrow) %v3014_v59, 8  ;;  %v3552_v59 = vpop.trf.xlu0 }
 0x2d6   :  { %v3027_v14 = vunpack.i.h.bf16 %v3552_v59 }
 0x2d8   :  { %v2016_v50 = vrot.slane %v3027_v14, 4 }
 0x303   :  { %v1109_v35 = vpop.xlane.xlu2 %1108 }
 0x304   :  { %v1119_v41 = vsub.f32 %v1103_v24, %v1109_v35  ;;  %v3024_v35 = vunpack.i.l.bf16 %v3552_v59 }
 0x306   :  { %v1115_v43 = vpop.xlane.xlu1 %1114  ;;  %v1123_v63 = vmul.f32 1.442695, %v1119_v41 }
 0x307   :  { %v1121_v54 = vsub.f32 %v1105_v27, %v1115_v43 }
 0x309   :  { %v1127_v56 = vmul.f32 1.442695, %v1121_v54 }
 0x30b   :  { %v1118_v36 = vpop.xlane.xlu2 %1117 }
 0x30c   :  { %v1122_v34 = vsub.f32 %v1106_v31, %v1118_v36 }
 0x30e   :  { %v1129_v37 = vmul.f32 1.442695, %v1122_v34  ;;  %v1112_v5 = vpop.xlane.xlu1 %1111 }
 0x30f   :  { %v1120_v9 = vsub.f32 %v1104_v32, %v1112_v5 }
 0x310   :  { %3070 = vpow2.f32 %v1129_v37 }
 0x311   :  { %3072 = vpow2.f32 %v1127_v56  ;;  %v1125_v10 = vmul.f32 1.442695, %v1120_v9 }
 0x316   :  { %v3071_v38 = vpop.eup %3070 }
 0x317   :  { %v1140_v39 = vsel %vm1001_vm1, %v3071_v38, 0.0  ;;  %v3554_v61 = vpop.eup %3072 }
 0x318   :  { %1141 = vadd.xlane.f32.xlu0 %v1140_v39  ;;  %v1137_v62 = vsel %vm1001_vm1, %v3554_v61, 0.0 }
 0x32a   :  { %1481 = vrot.lane.b32.xlu2 %v3543_v40, %s3209_s30 }
 0x332   :  { %1484 = vrot.lane.b32.xlu2 %v3543_v40, %s3210_s2 }
 0x341   :  { %3036 = vxpose.xlu0.b32.start.end [1/1] (short) (narrow) %v3035_v4, 8 }
 0x35a   :  { %v3560_v4 = vpop.trf.xlu2 }
 0x35b   :  { %1138 = vadd.xlane.f32.xlu2 %v1137_v62  ;;  %v3034_v51 = vunpack.i.h.bf16 %v3560_v4  ;;  %v3031_v34 = vunpack.i.l.bf16 %v3560_v4 }
 0x35d   :  { %v1992_v29 = vrot.slane %v3034_v51, 4 }
 0x373   :  { %1487 = vrot.lane.b32.xlu2 %v3543_v40, %s3211_s5 }
 0x379   :  { %v3016_v15 = vpop.trf.xlu1 }
 0x37a   :  { %v3020_v19 = vunpack.i.h.bf16 %v3016_v15  ;;  %v3017_v20 = vunpack.i.l.bf16 %v3016_v15 }
 0x37c   :  { %v1994_v52 = vrot.slane %v3020_v19, 4  ;;  %v2018_v27 = vrot.slane %v3017_v20, 4  ;;  %v2017_v32 = vsel %vm77_vm0, %v2016_v50, %v3017_v20  ;;  %v1993_v56 = vsel %vm77_vm0, %v1992_v29, %v3020_v19 }
 0x37d   :  { %v3592_v54 = vperm.slane %v2017_v32, %v3280_v11  ;;  %v1999_v4 = vperm.slane %v1993_v56, %v3280_v11 }
 0x37e   :  { %v1995_v37 = vsel %vm77_vm0, %v3034_v51, %v1994_v52 }
 0x37f   :  { %v2003_v62 = vperm.slane %v1995_v37, %v3280_v11  ;;  %v2042_v15 = vrot.slane %v1999_v4, 4 }
 0x384   :  { %v3571_v13 = vpop.permute.xlu2 %1481 }
 0x385   :  { %v1504_v59 = vrot.slane %v3571_v13, 4 }
 0x38b   :  { %v1142_v42 = vpop.xlane.xlu0 %1141 }
 0x38c   :  { %3074 = vrcp.f32 %v1142_v42  ;;  %v1196_v3 = vand.u32 2147483648, %v1142_v42  ;;  %v1194_v46 = vand.u32 2147483647, %v1142_v42  ;;  %vm1190_vm5 = vweird.f32 %v1142_v42  ;;  %v1485_v6 = vpop.permute.xlu2 %1484 }
 0x38d   :  { %3076 = vpow2.f32 %v1123_v63  ;;  %v1490_v24 = vrot.slane %v1485_v6, 4  ;;  %v1493_v30 = vsel %vm77_vm0, %v1485_v6, %v1492_v22 }
 0x38e   :  { %v1197_v49 = vor.u32 1.1754944e-38, %v1196_v3  ;;  %vm1195_vm7 = vcmp.eq.f32.partialorder %v1194_v46, 8.507059e+37  ;;  %3078 = vpow2.f32 %v1125_v10 }
 0x38f   :  { %v1491_v21 = vsel %vm77_vm0, %v1490_v24, %v3543_v40  ;;  %v3589_v40 = vperm.slane %v1493_v30, %v3280_v11 }
 0x390   :  { %v3586_v43 = vperm.slane %v1491_v21, %v3280_v11 }
 0x392   :  { %v3075_v0 = vpop.eup %3074  ;;  %v1516_v63 = vrot.slane %v3586_v43, 4 }
 0x393   :  { %v1186_v33 = vmul.f32 %v3075_v0, %v1142_v42  ;;  %vm1191_vm4 = vweird.f32 %v3075_v0  ;;  %v3562_v47 = vpop.eup %3076  ;;  %v2006_v42 = vrot.slane %v3031_v34, 4 }
 0x394   :  { %vm1192_vm6 = vmor %vm1190_vm5, %vm1191_vm4  ;;  %v1131_v57 = vsel %vm1001_vm1, %v3562_v47, 0.0  ;;  %v3567_v12 = vpop.eup %3078 }
 0x395   :  { %v1187_v44 = vsub.f32 1.0, %v1186_v33  ;;  %v1134_v7 = vsel %vm1001_vm1, %v3567_v12, 0.0  ;;  %v2066_v33 = vrot.slane %v3592_v54, 4 }
 0x397   :  { %v1188_v45 = vmul.f32 %v3075_v0, %v1187_v44 }
 0x399   :  { %v1189_v48 = vadd.f32 %v3075_v0, %v1188_v45 }
 0x39b   :  { %v1193_v58 = vsel %vm1192_vm6, %v3075_v0, %v1189_v48  ;;  %v1528_v0 = vrot.slane %v3589_v40, 4  ;;  %v2054_v48 = vrot.slane %v2003_v62, 4 }
 0x39c   :  { %1132 = vadd.xlane.f32.xlu2 %v1131_v57  ;;  %v1198_v60 = vsel %vm1195_vm7, %v1197_v49, %v1193_v58 }
 0x39d   :  { %v1202_v8 = vmul.f32 %v3071_v38, %v1198_v60  ;;  %v2019_v38 = vsel %vm77_vm0, %v3027_v14, %v2018_v27 }
 0x39e   :  { %v2027_v41 = vperm.slane %v2019_v38, %v3280_v11 }
 0x39f   :  { %2918 = vmatmul.msk.f32.vlgmr.msrb.gmra.mxu3 %vm1001_vm1, %v1202_v8 }
 0x3a0   :  { %v2078_v49 = vrot.slane %v2027_v41, 4 }
 0x3b2   :  { %1135 = vadd.xlane.f32.xlu0 %v1134_v7 }
 0x3ce   :  { %v1139_v16 = vpop.xlane.xlu2 %1138 }
 0x3cf   :  { %3080 = vrcp.f32 %v1139_v16  ;;  %v1182_v23 = vand.u32 2147483648, %v1139_v16  ;;  %v1180_v25 = vand.u32 2147483647, %v1139_v16  ;;  %vm1176_vm9 = vweird.f32 %v1139_v16 }
 0x3d1   :  { %v1183_v31 = vor.u32 1.1754944e-38, %v1182_v23  ;;  %vm1181_vm11 = vcmp.eq.f32.partialorder %v1180_v25, 8.507059e+37 }
 0x3d5   :  { %v3081_v17 = vpop.eup %3080 }
 0x3d6   :  { %v1172_v53 = vmul.f32 %v3081_v17, %v1139_v16  ;;  %vm1177_vm8 = vweird.f32 %v3081_v17  ;;  %v1488_v46 = vpop.permute.xlu2 %1487 }
 0x3d7   :  { %vm1178_vm10 = vmor %vm1176_vm9, %vm1177_vm8  ;;  %v1502_v57 = vrot.slane %v1488_v46, 4  ;;  %v1505_v58 = vsel %vm77_vm0, %v1488_v46, %v1504_v59 }
 0x3d8   :  { %v1173_v18 = vsub.f32 1.0, %v1172_v53  ;;  %v1513_v53 = vperm.slane %v1505_v58, %v3280_v11 }
 0x3d9   :  { %v1503_v6 = vsel %vm77_vm0, %v1502_v57, %v3571_v13 }
 0x3da   :  { %v1174_v55 = vmul.f32 %v3081_v17, %v1173_v18  ;;  %v1509_v14 = vperm.slane %v1503_v6, %v3280_v11  ;;  %v1526_v46 = vrot.slane %v1513_v53, 4 }
 0x3dc   :  { %v1175_v26 = vadd.f32 %v3081_v17, %v1174_v55  ;;  %v1514_v23 = vrot.slane %v1509_v14, 4 }
 0x3de   :  { %v1179_v2 = vsel %vm1178_vm10, %v3081_v17, %v1175_v26  ;;  %v1515_v59 = vsel %vm77_vm0, %v1514_v23, %v3586_v43  ;;  %v1529_v43 = vsel %vm77_vm0, %v1513_v53, %v1528_v0 }
 0x3df   :  { %v1184_v36 = vsel %vm1181_vm11, %v1183_v31, %v1179_v2  ;;  %v1537_v57 = vperm.slane %v1529_v43, %v3290_v28 }
 0x3e0   :  { %v1201_v39 = vmul.f32 %v3554_v61, %v1184_v36  ;;  %v2030_v61 = vrot.slane %v3024_v35, 4 }
 0x3e2   :  { %2917 = vmatmul.msk.f32.vlgmr.msrb.gmra.mxu2 %vm1001_vm1, %v1201_v39 }
 0x3e5   :  { %v3037_v44 = vpop.trf.xlu0 }
 0x3e6   :  { %v3041_v3 = vunpack.i.h.bf16 %v3037_v44  ;;  %v3038_v45 = vunpack.i.l.bf16 %v3037_v44 }
 0x3e8   :  { %v2004_v60 = vrot.slane %v3041_v3, 4  ;;  %v2007_v5 = vsel %vm77_vm0, %v3041_v3, %v2006_v42  ;;  %v2028_v8 = vrot.slane %v3038_v45, 4  ;;  %v2031_v9 = vsel %vm77_vm0, %v3038_v45, %v2030_v61 }
 0x3e9   :  { %v2015_v10 = vperm.slane %v2007_v5, %v3280_v11  ;;  %v2039_v7 = vperm.slane %v2031_v9, %v3280_v11 }
 0x3ea   :  { %v2005_v16 = vsel %vm77_vm0, %v2004_v60, %v3031_v34  ;;  %v2029_v17 = vsel %vm77_vm0, %v2028_v8, %v3024_v35  ;;  %v1527_v60 = vsel %vm77_vm0, %v1526_v46, %v3589_v40 }
 0x3eb   :  { %v2035_v18 = vperm.slane %v2029_v17, %v3280_v11  ;;  %v2076_v19 = vrot.slane %v2039_v7, 4  ;;  %v2011_v20 = vperm.slane %v2005_v16, %v3280_v11  ;;  %v2055_v50 = vsel %vm77_vm0, %v2015_v10, %v2054_v48 }
 0x3ec   :  { %v2063_v51 = vperm.slane %v2055_v50, %v3290_v28  ;;  %v2079_v22 = vsel %vm77_vm0, %v2039_v7, %v2078_v49  ;;  %v2052_v13 = vrot.slane %v2015_v10, 4  ;;  %v1544_v10 = vrot.slane %v1537_v57, 4 }
 0x3ed   :  { %v2043_v24 = vsel %vm77_vm0, %v2011_v20, %v2042_v15  ;;  %v2067_v55 = vsel %vm77_vm0, %v2035_v18, %v2066_v33  ;;  %v2087_v25 = vperm.slane %v2079_v22, %v3290_v28  ;;  %v2077_v26 = vsel %vm77_vm0, %v2076_v19, %v2027_v41 }
 0x3ee   :  { %v2051_v52 = vperm.slane %v2043_v24, %v3290_v28  ;;  %v2075_v27 = vperm.slane %v2067_v55, %v3290_v28  ;;  %v2053_v29 = vsel %vm77_vm0, %v2052_v13, %v2003_v62  ;;  %v2083_v30 = vperm.slane %v2077_v26, %v3290_v28 }
 0x3ef   :  { %v2100_v31 = vrot.slane %v2087_v25, 4  ;;  %v2059_v21 = vperm.slane %v2053_v29, %v3290_v28  ;;  %v2102_v32 = vrot.slane %v2063_v51, 4  ;;  %v2040_v2 = vrot.slane %v2011_v20, 4 }
 0x3f0   :  { %v2092_v35 = vrot.slane %v2075_v27, 4  ;;  %v2096_v36 = vrot.slane %v2083_v30, 4  ;;  %v2064_v34 = vrot.slane %v2035_v18, 4  ;;  %v2094_v37 = vrot.slane %v2051_v52, 4 }
 0x3f1   :  { %v2101_v38 = vsel %vm77_vm0, %v2100_v31, %v2063_v51  ;;  %v2103_v39 = vsel %vm77_vm0, %v2087_v25, %v2102_v32  ;;  %v2041_v56 = vsel %vm77_vm0, %v2040_v2, %v1999_v4  ;;  %v1517_v4 = vsel %vm77_vm0, %v1509_v14, %v1516_v63 }
 0x3f2   :  { %v2093_v62 = vsel %vm77_vm0, %v2092_v35, %v2051_v52  ;;  %v2097_v41 = vsel %vm77_vm0, %v2096_v36, %v2059_v21  ;;  %v2047_v61 = vperm.slane %v2041_v56, %v3290_v28  ;;  %v2065_v42 = vsel %vm77_vm0, %v2064_v34, %v3592_v54 }
 0x3f3   :  { %v3042_v33 = vpack.i.bf16 %v2093_v62, %v2101_v38  ;;  %v3049_v44 = vpack.i.bf16 %v2103_v39, %v2097_v41  ;;  %v2071_v3 = vperm.slane %v2065_v42, %v3290_v28  ;;  %v2095_v45 = vsel %vm77_vm0, %v2075_v27, %v2094_v37 }
 0x3f4   :  { %v1525_v49 = vperm.slane %v1517_v4, %v3290_v28  ;;  %v2090_v58 = vrot.slane %v2047_v61, 4  ;;  %v1521_v54 = vperm.slane %v1515_v59, %v3290_v28  ;;  %v2098_v5 = vrot.slane %v2059_v21, 4 }
 0x3f5   :  { %3043 = vxpose.xlu1.b32.start.end [1/1] (short) (narrow) %v3042_v33, 8  ;;  %v2088_v48 = vrot.slane %v2071_v3, 4  ;;  %v1533_v63 = vperm.slane %v1527_v60, %v3290_v28  ;;  %v1545_v16 = vsel %vm77_vm0, 0.0, %v1544_v10 }
 0x3f6   :  { %v1540_v9 = vrot.slane %v1525_v49, 4  ;;  %v2091_v7 = vsel %vm77_vm0, %v2071_v3, %v2090_v58  ;;  %v2099_v15 = vsel %vm77_vm0, %v2083_v30, %v2098_v5  ;;  %v1698_v40 = vrot.slane %v1545_v16, 4 }
 0x3f7   :  { %v2089_v8 = vsel %vm77_vm0, %v2088_v48, %v2047_v61  ;;  %v1542_v6 = vrot.slane %v1533_v63, 4  ;;  %v1693_v14 = vsel %vm77_vm0, %v1544_v10, %v1533_v63  ;;  %v3063_v53 = vpack.i.bf16 %v2091_v7, %v2099_v15 }
 0x3f8   :  { %v3056_v0 = vpack.i.bf16 %v2095_v45, %v2089_v8  ;;  %v1682_v17 = vsel %vm77_vm0, %v1540_v9, %v1521_v54  ;;  %v1538_v20 = vrot.slane %v1521_v54, 4  ;;  %v1541_v50 = vsel %vm77_vm0, 0.0, %v1540_v9 }
 0x3f9   :  { %v1543_v18 = vsel %vm77_vm0, 0.0, %v1542_v6  ;;  %v1687_v51 = vrot.slane %v1541_v50, 4  ;;  %v1697_v13 = vperm.slane %v1693_v14, %v3280_v11  ;;  %v1686_v27 = vperm.slane %v1682_v17, %v3280_v11 }
 0x3fa   :  { %v1699_v19 = vsel %vm77_vm0, %v1698_v40, %v1543_v18  ;;  %v1539_v22 = vsel %vm77_vm0, 0.0, %v1538_v20 }
 0x3fb   :  { %v1703_v23 = vperm.slane %v1699_v19, %v3280_v11  ;;  %v1688_v55 = vsel %vm77_vm0, %v1687_v51, %v1539_v22  ;;  %v1718_v25 = vrot.slane %v1697_v13, 4  ;;  %v1706_v2 = vrot.slane %v1686_v27, 4 }
 0x3fc   :  { %v1692_v26 = vperm.slane %v1688_v55, %v3280_v11 }
 0x3fd   :  { %3050 = vxpose.xlu1.b32.start.end [1/1] (short) (narrow) %v3049_v44, 8  ;;  %v1716_v52 = vrot.slane %v1703_v23, 4  ;;  %v1719_v35 = vsel %vm77_vm0, %v1703_v23, %v1718_v25 }
 0x3fe   :  { %v1704_v29 = vrot.slane %v1692_v26, 4  ;;  %v1727_v36 = vperm.slane %v1719_v35, %v3290_v28  ;;  %v1707_v39 = vsel %vm77_vm0, %v1692_v26, %v1706_v2 }
 0x3ff   :  { %v1717_v30 = vsel %vm77_vm0, %v1716_v52, %v1697_v13  ;;  %v1715_v41 = vperm.slane %v1707_v39, %v3290_v28 }
 0x400   :  { %v1723_v21 = vperm.slane %v1717_v30, %v3290_v28  ;;  %v1705_v34 = vsel %vm77_vm0, %v1704_v29, %v1686_v27  ;;  %v1732_v61 = vrot.slane %v1727_v36, 4 }
 0x401   :  { %v1711_v56 = vperm.slane %v1705_v34, %v3290_v28  ;;  %v1734_v45 = vrot.slane %v1715_v41, 4 }
 0x402   :  { %v1728_v37 = vrot.slane %v1723_v21, 4  ;;  %v3675_v3 = vsel %vm77_vm0, %v1732_v61, %v1715_v41 }
 0x403   :  { %v1730_v44 = vrot.slane %v1711_v56, 4  ;;  %v3681_v48 = vsel %vm77_vm0, %v1727_v36, %v1734_v45 }
 0x404   :  { %v3672_v33 = vsel %vm77_vm0, %v1728_v37, %v1711_v56 }
 0x405   :  { %3057 = vxpose.xlu1.b32.start.end [1/1] (short) (narrow) %v3056_v0, 8  ;;  %v3678_v46 = vsel %vm77_vm0, %v1723_v21, %v1730_v44 }
 0x40d   :  { %3064 = vxpose.xlu1.b32.start.end [1/1] (short) (narrow) %v3063_v53, 8 }
 0x40f   :  { %v1133_v24 = vpop.xlane.xlu2 %1132 }
 0x410   :  { %3082 = vrcp.f32 %v1133_v24  ;;  %v1152_v59 = vand.u32 2147483647, %v1133_v24  ;;  %v1154_v62 = vand.u32 2147483648, %v1133_v24  ;;  %vm1148_vm13 = vweird.f32 %v1133_v24 }
 0x412   :  { %v1155_v43 = vor.u32 1.1754944e-38, %v1154_v62  ;;  %vm1153_vm15 = vcmp.eq.f32.partialorder %v1152_v59, 8.507059e+37 }
 0x416   :  { %v3083_v31 = vpop.eup %3082 }
 0x417   :  { %v1144_v32 = vmul.f32 %v3083_v31, %v1133_v24  ;;  %vm1149_vm12 = vweird.f32 %v3083_v31 }
 0x418   :  { %vm1150_vm14 = vmor %vm1148_vm13, %vm1149_vm12 }
 0x419   :  { %v1145_v38 = vsub.f32 1.0, %v1144_v32 }
 0x41b   :  { %v1146_v42 = vmul.f32 %v3083_v31, %v1145_v38 }
 0x41d   :  { %v1147_v4 = vadd.f32 %v3083_v31, %v1146_v42 }
 0x41f   :  { %v1151_v49 = vsel %vm1150_vm14, %v3083_v31, %v1147_v4 }
 0x420   :  { %v1156_v57 = vsel %vm1153_vm15, %v1155_v43, %v1151_v49 }
 0x421   :  { %v1199_v58 = vmul.f32 %v3562_v47, %v1156_v57 }
 0x422   :  { %v1346_v2 = vpop.f32.mrf.mxu3 }
 0x423   :  { %2915 = vmatmul.msk.f32.vlgmr.msrb.gmra.mxu0 %vm1001_vm1, %v1199_v58  ;;  %v1361_v39 = vrot.slane %v1346_v2, 4 }
 0x425   :  { %v1136_v54 = vpop.xlane.xlu0 %1135 }
 0x426   :  { %3084 = vrcp.f32 %v1136_v54  ;;  %v1168_v63 = vand.u32 2147483648, %v1136_v54  ;;  %v1166_v10 = vand.u32 2147483647, %v1136_v54  ;;  %vm1162_vm3 = vweird.f32 %v1136_v54 }
 0x428   :  { %v1169_v7 = vor.u32 1.1754944e-38, %v1168_v63  ;;  %vm1167_vm5 = vcmp.eq.f32.partialorder %v1166_v10, 8.507059e+37 }
 0x42c   :  { %v3085_v60 = vpop.eup %3084 }
 0x42d   :  { %v1158_v5 = vmul.f32 %v3085_v60, %v1136_v54  ;;  %vm1163_vm2 = vweird.f32 %v3085_v60 }
 0x42e   :  { %vm1164_vm4 = vmor %vm1162_vm3, %vm1163_vm2 }
 0x42f   :  { %v1159_v8 = vsub.f32 1.0, %v1158_v5 }
 0x431   :  { %v1160_v9 = vmul.f32 %v3085_v60, %v1159_v8 }
 0x433   :  { %v1161_v0 = vadd.f32 %v3085_v60, %v1160_v9 }
 0x435   :  { %v1165_v15 = vsel %vm1164_vm4, %v3085_v60, %v1161_v0  ;;  %vm1472_vm4 = vcmask 130048  }
 0x436   :  { %v1170_v6 = vsel %vm1167_vm5, %v1169_v7, %v1165_v15 }
 0x437   :  { %v1200_v47 = vmul.f32 %v3567_v12, %v1170_v6 }
 0x439   :  { %2916 = vmatmul.msk.f32.vlgmr.msrb.gmra.mxu1 %vm1001_vm1, %v1200_v47 }
 0x465   :  { %v1323_v14 = vpop.f32.mrf.mxu2 }
 0x466   :  { %v1349_v51 = vrot.slane %v1323_v14, 4 }
 0x499   :  { %v3044_v16 = vpop.trf.xlu1 }
 0x49a   :  { %v3048_v40 = vunpack.i.h.bf16 %v3044_v16  ;;  %v3045_v53 = vunpack.i.l.bf16 %v3044_v16 }
 0x49c   :  { %v2360_v22 = vrot.slane %v3048_v40, 4  ;;  %v2372_v13 = vrot.slane %v3045_v53, 4 }
 0x4a0   :  { %v1277_v18 = vpop.f32.mrf.mxu0 }
 0x4a1   :  { %v3051_v17 = vpop.trf.xlu1  ;;  %v1351_v23 = vrot.slane %v1277_v18, 4  ;;  %v1350_v24 = vsel %vm77_vm0, %v1349_v51, %v1277_v18 }
 0x4a2   :  { %v3052_v20 = vunpack.i.l.bf16 %v3051_v17  ;;  %v3055_v55 = vunpack.i.h.bf16 %v3051_v17  ;;  %v1356_v27 = vperm.slane %v1350_v24, %v3280_v11 }
 0x4a3   :  { %v1352_v52 = vsel %vm77_vm0, %v1323_v14, %v1351_v23 }
 0x4a4   :  { %v2373_v12 = vsel %vm77_vm0, %v2372_v13, %v3052_v20  ;;  %v2378_v29 = vrot.slane %v3055_v55, 4  ;;  %v1360_v34 = vperm.slane %v1352_v52, %v3280_v11  ;;  %v1375_v62 = vrot.slane %v1356_v27, 4 }
 0x4a5   :  { %v2377_v30 = vperm.slane %v2373_v12, %v3280_v11 }
 0x4a6   :  { %v1387_v49 = vrot.slane %v1360_v34, 4 }
 0x4a7   :  { %v2398_v41 = vrot.slane %v2377_v30, 4 }
 0x4a9   :  { %v3058_v19 = vpop.trf.xlu1 }
 0x4aa   :  { %v3059_v50 = vunpack.i.l.bf16 %v3058_v19  ;;  %v3062_v25 = vunpack.i.h.bf16 %v3058_v19 }
 0x4ac   :  { %v2361_v26 = vsel %vm77_vm0, %v2360_v22, %v3059_v50  ;;  %v2366_v31 = vrot.slane %v3062_v25, 4 }
 0x4ad   :  { %v2365_v21 = vperm.slane %v2361_v26, %v3280_v11 }
 0x4af   :  { %v2386_v61 = vrot.slane %v2365_v21, 4 }
 0x4b1   :  { %v3065_v32 = vpop.trf.xlu1 }
 0x4b2   :  { %v3069_v35 = vunpack.i.h.bf16 %v3065_v32  ;;  %v3066_v36 = vunpack.i.l.bf16 %v3065_v32 }
 0x4b4   :  { %v2367_v37 = vsel %vm77_vm0, %v2366_v31, %v3069_v35  ;;  %v2379_v38 = vsel %vm77_vm0, %v2378_v29, %v3066_v36 }
 0x4b5   :  { %v2371_v56 = vperm.slane %v2367_v37, %v3280_v11  ;;  %v2383_v59 = vperm.slane %v2379_v38, %v3280_v11 }
 0x4b6   :  { %v1300_v42 = vpop.f32.mrf.mxu1 }
 0x4b7   :  { %v2384_v44 = vrot.slane %v2371_v56, 4  ;;  %v2396_v45 = vrot.slane %v2383_v59, 4  ;;  %v1362_v4 = vsel %vm77_vm0, %v1361_v39, %v1300_v42  ;;  %v1363_v43 = vrot.slane %v1300_v42, 4  ;;  %v2923_v42 = vld [vmem:[%s3943_s3 + $0x1] sm:$0x1]  ;;  %s3215_s3 = smov 16  }
 0x4b8   :  { %v1368_v57 = vperm.slane %v1362_v4, %v3280_v11  ;;  %v2387_v58 = vsel %vm77_vm0, %v2371_v56, %v2386_v61  ;;  %v2399_v54 = vsel %vm77_vm0, %v2383_v59, %v2398_v41  ;;  %vm2514_vm6 = vcmp.eq.f32.partialorder %v2923_v42, 0.0 }
 0x4b9   :  { %v1364_v60 = vsel %vm77_vm0, %v1346_v2, %v1363_v43  ;;  %v2395_v5 = vperm.slane %v2387_v58, %v3290_v28  ;;  %v2407_v8 = vperm.slane %v2399_v54, %v3290_v28  ;;  %v2385_v63 = vsel %vm77_vm0, %v2384_v44, %v2365_v21 }
 0x4ba   :  { %v1372_v9 = vperm.slane %v1364_v60, %v3280_v11  ;;  %v1373_v10 = vrot.slane %v1368_v57, 4  ;;  %v1376_v0 = vsel %vm77_vm0, %v1368_v57, %v1375_v62  ;;  %v2391_v7 = vperm.slane %v2385_v63, %v3290_v28 }
 0x4bb   :  { %v1384_v15 = vperm.slane %v1376_v0, %v3290_v28  ;;  %v2412_v6 = vrot.slane %v2407_v8, 4  ;;  %v2414_v47 = vrot.slane %v2395_v5, 4  ;;  %v2397_v16 = vsel %vm77_vm0, %v2396_v45, %v2377_v30 }
 0x4bc   :  { %v1374_v17 = vsel %vm77_vm0, %v1373_v10, %v1356_v27  ;;  %v1385_v14 = vrot.slane %v1372_v9, 4  ;;  %v1388_v40 = vsel %vm77_vm0, %v1372_v9, %v1387_v49  ;;  %v2403_v53 = vperm.slane %v2397_v16, %v3290_v28 }
 0x4bd   :  { %v1380_v18 = vperm.slane %v1374_v17, %v3290_v28  ;;  %v1396_v19 = vperm.slane %v1388_v40, %v3290_v28  ;;  %v1399_v20 = vrot.slane %v1384_v15, 4  ;;  %v2413_v50 = vsel %vm77_vm0, %v2412_v6, %v2395_v5 }
 0x4be   :  { %v1386_v51 = vsel %vm77_vm0, %v1385_v14, %v1360_v34  ;;  %2480 = vmatpush.msra.mxu2 %v2413_v50  ;;  %v2415_v22 = vsel %vm77_vm0, %v2407_v8, %v2414_v47  ;;  %v2408_v13 = vrot.slane %v2403_v53, 4  ;;  %v2410_v23 = vrot.slane %v2391_v7, 4  ;;  %v1615_v47 = vld [vmem:[#allocation7 + $0x8] sm:$0xff] }
 0x4bf   :  { %v1392_v24 = vperm.slane %v1386_v51, %v3290_v28  ;;  %v1397_v55 = vrot.slane %v1380_v18, 4  ;;  %v1400_v25 = vsel %vm77_vm0, 0.0, %v1399_v20  ;;  %v1403_v12 = vrot.slane %v1396_v19, 4  ;;  %2503 = vmatpush.msra.mxu3 %v2415_v22  ;;  %2921 = vmatmul.msk.f32.vlgmr.msra.gmra.mxu2 %vm1001_vm1, %v3675_v3 }
 0x4c0   :  { %v1410_v26 = vrot.slane %v1400_v25, 4  ;;  %2922 = vmatmul.msk.f32.vlgmr.msra.gmra.mxu3 %vm1001_vm1, %v3681_v48  ;;  %v2409_v52 = vsel %vm77_vm0, %v2408_v13, %v2391_v7  ;;  %v2411_v27 = vsel %vm77_vm0, %v2403_v53, %v2410_v23  ;;  %v1405_v2 = vsel %vm77_vm0, %v1399_v20, %v1380_v18 }
 0x4c1   :  { %v1398_v29 = vsel %vm77_vm0, 0.0, %v1397_v55  ;;  %v1401_v30 = vrot.slane %v1392_v24, 4  ;;  %v1404_v31 = vsel %vm77_vm0, 0.0, %v1403_v12  ;;  %2434 = vmatpush.msra.mxu0 %v2409_v52  ;;  %2457 = vmatpush.msra.mxu1 %v2411_v27  ;;  %v1416_v35 = vsel %vm77_vm0, %v1403_v12, %v1392_v24 }
 0x4c2   :  { %v1421_v21 = vrot.slane %v1404_v31, 4  ;;  %2919 = vmatmul.msk.f32.vlgmr.msra.gmra.mxu0 %vm1001_vm1, %v3672_v33  ;;  %2920 = vmatmul.msk.f32.vlgmr.msra.gmra.mxu1 %vm1001_vm1, %v3678_v46  ;;  %v1411_v3 = vsel %vm77_vm0, %v1410_v26, %v1398_v29  ;;  %v3747_v46 = vperm.slane %v1405_v2, %v3280_v11  ;;  %v3750_v37 = vperm.slane %v1416_v35, %v3280_v11 }
 0x4c3   :  { %v1402_v48 = vsel %vm77_vm0, 0.0, %v1401_v30  ;;  %v3737_v32 = vperm.slane %v1411_v3, %v3280_v11  ;;  %v2515_v44 = vsel %vm2514_vm6, 1, %v3214_v1  ;;  %v1628_v27 = vrot.slane %v1615_v47, 4 }
 0x4c4   :  { %v1422_v36 = vsel %vm77_vm0, %v1421_v21, %v1402_v48  ;;  %v2516_v45 = vperm.slane %v2515_v44, 0  ;;  %v1441_v31 = vrot.slane %v3750_v37, 4 }
 0x4c5   :  { %v3743_v34 = vperm.slane %v1422_v36, %v3280_v11  ;;  %v1427_v33 = vrot.slane %v3737_v32, 4 }
 0x4c6   :  { %vm3772_vm7 = vcmp.eq.s32.totalorder %v2516_v45, 1 }
 0x4c7   :  { %v1439_v38 = vrot.slane %v3743_v34, 4  ;;  %v1428_v39 = vsel %vm77_vm0, %v1427_v33, %v3747_v46 }
 0x4c8   :  { %v3761_v62 = vperm.slane %v1428_v39, %v3290_v28 }
 0x4c9   :  { %v1440_v56 = vsel %vm77_vm0, %v1439_v38, %v3750_v37  ;;  %v1442_v38 = vsel %vm77_vm0, %v3743_v34, %v1441_v31  ;;  %v1429_v37 = vrot.slane %v3747_v46, 4 }
 0x4ca   :  { %v3758_v59 = vperm.slane %v1440_v56, %v3290_v28  ;;  %v3817_v44 = vperm.slane %v1442_v38, %v3290_v28 }
 0x4cc   :  { %v1451_v41 = vrot.slane %v3758_v59, 4 }
 0x4ce   :  { %v3766_v61 = vsel %vm77_vm0, %v1451_v41, %v3761_v62 }
 0x53f   :  { %v2436_v4 = vpop.f32.mrf.mxu0  ;;  %v2459_v43 = vpop.f32.mrf.mxu1 }
 0x540   :  { %v2508_v57 = vmul.f32 0.35355338, %v2436_v4  ;;  %v2509_v58 = vmul.f32 0.35355338, %v2459_v43 }
 0x542   :  { %v2482_v54 = vpop.f32.mrf.mxu2  ;;  %v2519_v60 = vsel %vm3772_vm7, 1e-09, %v2509_v58  ;;  %v2518_v5 = vsel %vm3772_vm7, 1e-09, %v2508_v57  ;;  %v1430_v58 = vsel %vm77_vm0, %v3737_v32, %v1429_v37 }
 0x543   :  { %v2510_v8 = vmul.f32 0.35355338, %v2482_v54  ;;  %v2505_v63 = vpop.f32.mrf.mxu3  ;;  %v2525_v1 = vsel %vm1001_vm1, %v2519_v60, -inf  ;;  %v2522_v9 = vsel %vm1001_vm1, %v2518_v5, -inf  ;;  %v1455_v54 = vrot.slane %v3817_v44, 4 }
 0x544   :  { %v2511_v10 = vmul.f32 0.35355338, %v2505_v63  ;;  %2526 = vmax.xlane.f32.xlu2 %v2525_v1  ;;  %2523 = vmax.xlane.f32.xlu0 %v2522_v9 }
 0x545   :  { %v2520_v0 = vsel %vm3772_vm7, 1e-09, %v2510_v8 }
 0x546   :  { %v2528_v7 = vsel %vm1001_vm1, %v2520_v0, -inf  ;;  %v2521_v15 = vsel %vm3772_vm7, 1e-09, %v2511_v10  ;;  %v1438_v10 = vperm.slane %v1430_v58, %v3290_v28 }
 0x547   :  { %2529 = vmax.xlane.f32.xlu1 %v2528_v7  ;;  %v2531_v6 = vsel %vm1001_vm1, %v2521_v15, -inf }
 0x548   :  { %v1457_v37 = vrot.slane %v1438_v10, 4 }
 0x54c   :  { %2532 = vmax.xlane.f32.xlu2 %v2531_v6 }
 0x558   :  { %1617 = vrot.lane.b32.xlu0 %v1615_v47, %s3209_s30 }
 0x560   :  { %1623 = vrot.lane.b32.xlu1 %v1615_v47, %s3211_s5 }
 0x564   :  { %1620 = vrot.lane.b32.xlu2 %v1615_v47, %s3210_s2 }
 0x5b7   :  { %v2527_v16 = vpop.xlane.xlu2 %2526  ;;  %v2524_v17 = vpop.xlane.xlu0 %2523 }
 0x5b8   :  { %v2534_v14 = vsub.f32 %v2518_v5, %v2524_v17  ;;  %v2535_v19 = vsub.f32 %v2519_v60, %v2527_v16  ;;  %v1453_v16 = vrot.slane %v3761_v62, 4 }
 0x5ba   :  { %v2538_v40 = vmul.f32 1.442695, %v2534_v14  ;;  %v2530_v53 = vpop.xlane.xlu1 %2529  ;;  %v2540_v22 = vmul.f32 1.442695, %v2535_v19 }
 0x5bb   :  { %v2536_v18 = vsub.f32 %v2520_v0, %v2530_v53 }
 0x5bc   :  { %3086 = vpow2.f32 %v2538_v40 }
 0x5bd   :  { %v2542_v20 = vmul.f32 1.442695, %v2536_v18 }
 0x5bf   :  { %3088 = vpow2.f32 %v2542_v20  ;;  %v2533_v50 = vpop.xlane.xlu2 %2532 }
 0x5c0   :  { %v2537_v51 = vsub.f32 %v2521_v15, %v2533_v50 }
 0x5c2   :  { %v2544_v13 = vmul.f32 1.442695, %v2537_v51  ;;  %v3791_v23 = vpop.eup %3086 }
 0x5c3   :  { %v2546_v24 = vsel %vm1001_vm1, %v3791_v23, 0.0 }
 0x5c4   :  { %3090 = vpow2.f32 %v2544_v13  ;;  %2547 = vadd.xlane.f32.xlu1 %v2546_v24 }
 0x5c5   :  { %v3795_v55 = vpop.eup %3088  ;;  %3092 = vpow2.f32 %v2540_v22 }
 0x5c6   :  { %v2552_v25 = vsel %vm1001_vm1, %v3795_v55, 0.0 }
 0x5c7   :  { %2553 = vadd.xlane.f32.xlu0 %v2552_v25  ;;  %v1621_v29 = vpop.permute.xlu2 %1620 }
 0x5c8   :  { %v1626_v21 = vrot.slane %v1621_v29, 4  ;;  %v1629_v48 = vsel %vm77_vm0, %v1621_v29, %v1628_v27 }
 0x5c9   :  { %v1637_v35 = vperm.slane %v1629_v48, %v3280_v11 }
 0x5ca   :  { %v3799_v12 = vpop.eup %3090  ;;  %v1618_v30 = vpop.permute.xlu0 %1617  ;;  %v1627_v2 = vsel %vm77_vm0, %v1626_v21, %v1615_v47  ;;  %v1456_v47 = vsel %vm77_vm0, %v1455_v54, %v1438_v10 }
 0x5cb   :  { %v3801_v26 = vpop.eup %3092  ;;  %v2555_v52 = vsel %vm1001_vm1, %v3799_v12, 0.0  ;;  %v1640_v36 = vrot.slane %v1618_v30, 4  ;;  %v1633_v33 = vperm.slane %v1627_v2, %v3280_v11  ;;  %v1664_v39 = vrot.slane %v1637_v35, 4 }
 0x5cc   :  { %2556 = vadd.xlane.f32.xlu2 %v2555_v52  ;;  %v2549_v3 = vsel %vm1001_vm1, %v3801_v26, 0.0 }
 0x5cd   :  { %v1652_v45 = vrot.slane %v1633_v33, 4 }
 0x5cf   :  { %2550 = vadd.xlane.f32.xlu0 %v2549_v3 }
 0x5d2   :  { %v1624_v56 = vpop.permute.xlu1 %1623 }
 0x5d3   :  { %v1638_v41 = vrot.slane %v1624_v56, 4  ;;  %v1641_v42 = vsel %vm77_vm0, %v1624_v56, %v1640_v36 }
 0x5d4   :  { %v1649_v4 = vperm.slane %v1641_v42, %v3280_v11 }
 0x5d5   :  { %v1639_v43 = vsel %vm77_vm0, %v1638_v41, %v1618_v30  ;;  %v1454_v30 = vsel %vm77_vm0, %v3758_v59, %v1453_v16 }
 0x5d6   :  { %v1645_v49 = vperm.slane %v1639_v43, %v3280_v11  ;;  %v1662_v57 = vrot.slane %v1649_v4, 4  ;;  %v1665_v34 = vsel %vm77_vm0, %v1649_v4, %v1664_v39 }
 0x5d7   :  { %v1673_v46 = vperm.slane %v1665_v34, %v3290_v28 }
 0x5d8   :  { %v1650_v60 = vrot.slane %v1645_v49, 4  ;;  %v1653_v5 = vsel %vm77_vm0, %v1645_v49, %v1652_v45  ;;  %v1663_v8 = vsel %vm77_vm0, %v1662_v57, %v1637_v35  ;;  %v1458_v49 = vsel %vm77_vm0, %v3817_v44, %v1457_v37 }
 0x5d9   :  { %v1661_v63 = vperm.slane %v1653_v5, %v3290_v28  ;;  %v1669_v1 = vperm.slane %v1663_v8, %v3290_v28  ;;  %v1680_v9 = vrot.slane %v1673_v46, 4 }
 0x5da   :  { %v1651_v0 = vsel %vm77_vm0, %v1650_v60, %v1633_v33 }
 0x5db   :  { %v1657_v32 = vperm.slane %v1651_v0, %v3290_v28  ;;  %v1676_v7 = vrot.slane %v1661_v63, 4  ;;  %v1678_v15 = vrot.slane %v1669_v1, 4  ;;  %v1681_v6 = vsel %vm77_vm0, 0.0, %v1680_v9 }
 0x5dc   :  { %v2634_v17 = vrot.slane %v1681_v6, 4  ;;  %v2629_v14 = vsel %vm77_vm0, %v1680_v9, %v1669_v1 }
 0x5dd   :  { %v1674_v40 = vrot.slane %v1657_v32, 4  ;;  %v1677_v53 = vsel %vm77_vm0, 0.0, %v1676_v7  ;;  %v2618_v18 = vsel %vm77_vm0, %v1676_v7, %v1657_v32  ;;  %v1679_v19 = vsel %vm77_vm0, 0.0, %v1678_v15  ;;  %1464 = vrot.lane.b32.xlu1 %v1456_v47, %s3215_s3 }
 0x5de   :  { %v2622_v20 = vperm.slane %v2618_v18, %v3280_v11  ;;  %v2623_v50 = vrot.slane %v1677_v53, 4  ;;  %v2633_v51 = vperm.slane %v2629_v14, %v3280_v11  ;;  %v2635_v62 = vsel %vm77_vm0, %v2634_v17, %v1679_v19 }
 0x5df   :  { %v1675_v22 = vsel %vm77_vm0, 0.0, %v1674_v40  ;;  %v2639_v13 = vperm.slane %v2635_v62, %v3280_v11 }
 0x5e0   :  { %v2624_v24 = vsel %vm77_vm0, %v2623_v50, %v1675_v22  ;;  %v2642_v25 = vrot.slane %v2622_v20, 4  ;;  %v2654_v52 = vrot.slane %v2633_v51, 4 }
 0x5e1   :  { %v2628_v27 = vperm.slane %v2624_v24, %v3280_v11  ;;  %v2652_v29 = vrot.slane %v2639_v13, 4 }
 0x5e2   :  { %v2655_v31 = vsel %vm77_vm0, %v2639_v13, %v2654_v52 }
 0x5e3   :  { %v2640_v21 = vrot.slane %v2628_v27, 4  ;;  %v2653_v3 = vsel %vm77_vm0, %v2652_v29, %v2633_v51  ;;  %v2643_v48 = vsel %vm77_vm0, %v2628_v27, %v2642_v25  ;;  %v2663_v2 = vperm.slane %v2655_v31, %v3290_v28 }
 0x5e4   :  { %1460 = vrot.lane.b32.xlu2 %v1454_v30, %s3206_s24  ;;  %v2659_v35 = vperm.slane %v2653_v3, %v3290_v28  ;;  %v2651_v36 = vperm.slane %v2643_v48, %v3290_v28 }
 0x5e5   :  { %v2641_v33 = vsel %vm77_vm0, %v2640_v21, %v2622_v20  ;;  %v2668_v38 = vrot.slane %v2663_v2, 4 }
 0x5e6   :  { %v2647_v59 = vperm.slane %v2641_v33, %v3290_v28  ;;  %v2664_v39 = vrot.slane %v2659_v35, 4  ;;  %v2670_v56 = vrot.slane %v2651_v36, 4 }
 0x5e7   :  { %v2669_v41 = vsel %vm77_vm0, %v2668_v38, %v2651_v36 }
 0x5e8   :  { %v2666_v42 = vrot.slane %v2647_v59, 4  ;;  %v2665_v45 = vsel %vm77_vm0, %v2664_v39, %v2647_v59  ;;  %v2671_v4 = vsel %vm77_vm0, %v2663_v2, %v2670_v56  ;;  %2736 = vmatpush.msrb.mxu2 %v2669_v41 }
 0x5e9   :  { %2690 = vmatpush.msrb.mxu0 %v2665_v45  ;;  %2759 = vmatpush.msrb.mxu3 %v2671_v4 }
 0x5ea   :  { %v2667_v43 = vsel %vm77_vm0, %v2659_v35, %v2666_v42 }
 0x5eb   :  { %2713 = vmatpush.msrb.mxu1 %v2667_v43 }
 0x5ec   :  { %1468 = vrot.lane.b32.xlu2 %v1458_v49, %s3216_s10 }
 0x637   :  { %v2548_v57 = vpop.xlane.xlu1 %2547 }
 0x638   :  { %3094 = vrcp.f32 %v2548_v57  ;;  %v2569_v1 = vand.u32 2147483648, %v2548_v57  ;;  %v2567_v9 = vand.u32 2147483647, %v2548_v57  ;;  %vm2563_vm9 = vweird.f32 %v2548_v57 }
 0x63a   :  { %v2554_v34 = vpop.xlane.xlu0 %2553  ;;  %v2570_v47 = vor.u32 1.1754944e-38, %v2569_v1  ;;  %vm2568_vm12 = vcmp.eq.f32.partialorder %v2567_v9, 8.507059e+37 }
 0x63b   :  { %3096 = vrcp.f32 %v2554_v34  ;;  %v2595_v0 = vand.u32 2147483647, %v2554_v34  ;;  %v2597_v32 = vand.u32 2147483648, %v2554_v34  ;;  %vm2591_vm13 = vweird.f32 %v2554_v34 }
 0x63d   :  { %vm2596_vm15 = vcmp.eq.f32.partialorder %v2595_v0, 8.507059e+37  ;;  %v2598_v19 = vor.u32 1.1754944e-38, %v2597_v32 }
 0x63e   :  { %v3095_v58 = vpop.eup %3094 }
 0x63f   :  { %v2557_v46 = vpop.xlane.xlu2 %2556  ;;  %v2559_v54 = vmul.f32 %v3095_v58, %v2548_v57  ;;  %vm2564_vm8 = vweird.f32 %v3095_v58 }
 0x640   :  { %3098 = vrcp.f32 %v2557_v46  ;;  %vm2565_vm11 = vmor %vm2563_vm9, %vm2564_vm8  ;;  %v2611_v51 = vand.u32 2147483648, %v2557_v46  ;;  %v2609_v25 = vand.u32 2147483647, %v2557_v46  ;;  %vm2605_vm3 = vweird.f32 %v2557_v46 }
 0x641   :  { %v3097_v60 = vpop.eup %3096  ;;  %v2560_v5 = vsub.f32 1.0, %v2559_v54  ;;  %vm1474_vm8 = vcmask 195584   ;;  %vm1476_vm9 = vcmask 261120  }
 0x642   :  { %v2587_v8 = vmul.f32 %v3097_v60, %v2554_v34  ;;  %v3867_v63 = vpop.xlane.xlu0 %2550  ;;  %vm2592_vm10 = vweird.f32 %v3097_v60  ;;  %v2612_v31 = vor.u32 1.1754944e-38, %v2611_v51  ;;  %vm2610_vm7 = vcmp.eq.f32.partialorder %v2609_v25, 8.507059e+37 }
 0x643   :  { %3100 = vrcp.f32 %v3867_v63  ;;  %v2561_v44 = vmul.f32 %v3095_v58, %v2560_v5  ;;  %vm2593_vm14 = vmor %vm2591_vm13, %vm2592_vm10  ;;  %v2583_v30 = vand.u32 2147483648, %v3867_v63  ;;  %vm2577_vm10 = vweird.f32 %v3867_v63 }
 0x644   :  { %v2588_v10 = vsub.f32 1.0, %v2587_v8 }
 0x645   :  { %v2562_v15 = vadd.f32 %v3095_v58, %v2561_v44  ;;  %v2584_v33 = vor.u32 1.1754944e-38, %v2583_v30 }
 0x646   :  { %v3099_v7 = vpop.eup %3098  ;;  %v2589_v6 = vmul.f32 %v3097_v60, %v2588_v10 }
 0x647   :  { %v2601_v16 = vmul.f32 %v3099_v7, %v2557_v46  ;;  %v1461_v17 = vpop.permute.xlu2 %1460  ;;  %v2566_v14 = vsel %vm2565_vm11, %v3095_v58, %v2562_v15  ;;  %vm2606_vm2 = vweird.f32 %v3099_v7 }
 0x648   :  { %v2590_v40 = vadd.f32 %v3097_v60, %v2589_v6  ;;  %v2571_v18 = vsel %vm2568_vm12, %v2570_v47, %v2566_v14  ;;  %vm2607_vm5 = vmor %vm2605_vm3, %vm2606_vm2  ;;  %v1471_v35 = vsel %vm1001_vm1, %v3766_v61, %v1461_v17 }
 0x649   :  { %v3101_v53 = vpop.eup %3100  ;;  %v2602_v20 = vsub.f32 1.0, %v2601_v16  ;;  %v2614_v22 = vmul.f32 %v3791_v23, %v2571_v18  ;;  %v2581_v23 = vand.u32 2147483647, %v3867_v63 }
 0x64a   :  { %v2594_v50 = vsel %vm2593_vm14, %v3097_v60, %v2590_v40  ;;  %v2573_v62 = vmul.f32 %v3101_v53, %v3867_v63  ;;  %vm2578_vm6 = vweird.f32 %v3101_v53 }
 0x64b   :  { %v2599_v13 = vsel %vm2596_vm15, %v2598_v19, %v2594_v50  ;;  %v2603_v24 = vmul.f32 %v3099_v7, %v2602_v20  ;;  %2924 = vmatmul.msk.f32.vlgmr.msrb.gmra.mxu0 %vm1001_vm1, %v2614_v22  ;;  %vm2579_vm11 = vmor %vm2577_vm10, %vm2578_vm6  ;;  %vm2582_vm12 = vcmp.eq.f32.partialorder %v2581_v23, 8.507059e+37 }
 0x64c   :  { %v2574_v52 = vsub.f32 1.0, %v2573_v62  ;;  %v2616_v27 = vmul.f32 %v3795_v55, %v2599_v13 }
 0x64d   :  { %v2604_v29 = vadd.f32 %v3099_v7, %v2603_v24 }
 0x64e   :  { %v2575_v21 = vmul.f32 %v3101_v53, %v2574_v52  ;;  %2926 = vmatmul.msk.f32.vlgmr.msrb.gmra.mxu2 %vm1001_vm1, %v2616_v27 }
 0x64f   :  { %v2608_v3 = vsel %vm2607_vm5, %v3099_v7, %v2604_v29  ;;  %v1469_v48 = vpop.permute.xlu2 %1468  ;;  %v1465_v36 = vpop.permute.xlu1 %1464 }
 0x650   :  { %v2613_v2 = vsel %vm2610_vm7, %v2612_v31, %v2608_v3  ;;  %v2576_v55 = vadd.f32 %v3101_v53, %v2575_v21  ;;  %v1473_v38 = vsel %vm1472_vm4, %v1471_v35, %v1465_v36 }
 0x651   :  { %v2617_v59 = vmul.f32 %v3799_v12, %v2613_v2  ;;  %v1475_v56 = vsel %vm1474_vm8, %v1473_v38, %v1469_v48 }
 0x652   :  { %v2580_v39 = vsel %vm2579_vm11, %v3101_v53, %v2576_v55  ;;  %1477 = vst.msk [vmem:[#allocation8] sm:$0xff] %vm1476_vm9, %v1475_v56 }
 0x653   :  { %v2585_v37 = vsel %vm2582_vm12, %v2584_v33, %v2580_v39  ;;  %2927 = vmatmul.msk.f32.vlgmr.msrb.gmra.mxu3 %vm1001_vm1, %v2617_v59 }
 0x654   :  { %v2615_v41 = vmul.f32 %v3801_v26, %v2585_v37 }
 0x656   :  { %2925 = vmatmul.msk.f32.vlgmr.msrb.gmra.mxu1 %vm1001_vm1, %v2615_v41 }
 0x6c8   :  { %v2692_v61 = vpop.f32.mrf.mxu0 }
 0x6c9   :  { %v2766_v42 = vrot.slane %v2692_v61, 4 }
 0x6d1   :  { %v2738_v45 = vpop.f32.mrf.mxu2 }
 0x6d2   :  { %v2764_v4 = vrot.slane %v2738_v45, 4  ;;  %v2767_v43 = vsel %vm77_vm0, %v2738_v45, %v2766_v42 }
 0x6d3   :  { %v2715_v12 = vpop.f32.mrf.mxu1  ;;  %v2775_v57 = vperm.slane %v2767_v43, %v3280_v11 }
 0x6d4   :  { %v2765_v49 = vsel %vm77_vm0, %v2764_v4, %v2692_v61  ;;  %v2778_v34 = vrot.slane %v2715_v12, 4 }
 0x6d5   :  { %v2771_v58 = vperm.slane %v2765_v49, %v3280_v11  ;;  %v2802_v60 = vrot.slane %v2775_v57, 4 }
 0x6d6   :  { %v2761_v46 = vpop.f32.mrf.mxu3 }
 0x6d7   :  { %v2776_v54 = vrot.slane %v2761_v46, 4  ;;  %v2779_v26 = vsel %vm77_vm0, %v2761_v46, %v2778_v34  ;;  %v2790_v63 = vrot.slane %v2771_v58, 4 }
 0x6d8   :  { %v2787_v5 = vperm.slane %v2779_v26, %v3280_v11 }
 0x6d9   :  { %v2777_v8 = vsel %vm77_vm0, %v2776_v54, %v2715_v12 }
 0x6da   :  { %v2783_v1 = vperm.slane %v2777_v8, %v3280_v11  ;;  %v2800_v44 = vrot.slane %v2787_v5, 4  ;;  %v2803_v9 = vsel %vm77_vm0, %v2787_v5, %v2802_v60 }
 0x6db   :  { %v2811_v10 = vperm.slane %v2803_v9, %v3290_v28 }
 0x6dc   :  { %v2788_v0 = vrot.slane %v2783_v1, 4  ;;  %v2791_v32 = vsel %vm77_vm0, %v2783_v1, %v2790_v63  ;;  %v2801_v7 = vsel %vm77_vm0, %v2800_v44, %v2775_v57 }
 0x6dd   :  { %v2799_v15 = vperm.slane %v2791_v32, %v3290_v28  ;;  %v2807_v6 = vperm.slane %v2801_v7, %v3290_v28  ;;  %v2818_v47 = vrot.slane %v2811_v10, 4 }
 0x6de   :  { %v2789_v16 = vsel %vm77_vm0, %v2788_v0, %v2771_v58 }
 0x6df   :  { %v2795_v17 = vperm.slane %v2789_v16, %v3290_v28  ;;  %v2814_v14 = vrot.slane %v2799_v15, 4  ;;  %v2816_v40 = vrot.slane %v2807_v6, 4  ;;  %v2819_v53 = vsel %vm77_vm0, 0.0, %v2818_v47 }
 0x6e0   :  { %v2831_v18 = vsel %vm77_vm0, %v2818_v47, %v2807_v6  ;;  %v2836_v19 = vrot.slane %v2819_v53, 4 }
 0x6e1   :  { %v2812_v20 = vrot.slane %v2795_v17, 4  ;;  %v2815_v50 = vsel %vm77_vm0, 0.0, %v2814_v14  ;;  %v2817_v51 = vsel %vm77_vm0, 0.0, %v2816_v40  ;;  %v2835_v62 = vperm.slane %v2831_v18, %v3280_v11 }
 0x6e2   :  { %v2825_v22 = vrot.slane %v2815_v50, 4  ;;  %v2820_v13 = vsel %vm77_vm0, %v2814_v14, %v2795_v17  ;;  %v2837_v24 = vsel %vm77_vm0, %v2836_v19, %v2817_v51 }
 0x6e3   :  { %v2813_v25 = vsel %vm77_vm0, 0.0, %v2812_v20  ;;  %v2824_v52 = vperm.slane %v2820_v13, %v3280_v11  ;;  %v2841_v27 = vperm.slane %v2837_v24, %v3280_v11  ;;  %v2856_v29 = vrot.slane %v2835_v62, 4 }
 0x6e4   :  { %v2826_v30 = vsel %vm77_vm0, %v2825_v22, %v2813_v25 }
 0x6e5   :  { %v2830_v31 = vperm.slane %v2826_v30, %v3280_v11  ;;  %v2844_v21 = vrot.slane %v2824_v52, 4  ;;  %v2857_v23 = vsel %vm77_vm0, %v2841_v27, %v2856_v29  ;;  %v2854_v3 = vrot.slane %v2841_v27, 4 }
 0x6e6   :  { %v2865_v48 = vperm.slane %v2857_v23, %v3290_v28 }
 0x6e7   :  { %v2845_v2 = vsel %vm77_vm0, %v2830_v31, %v2844_v21  ;;  %v2842_v55 = vrot.slane %v2830_v31, 4  ;;  %v2855_v35 = vsel %vm77_vm0, %v2854_v3, %v2835_v62 }
 0x6e8   :  { %v2853_v36 = vperm.slane %v2845_v2, %v3290_v28  ;;  %v2870_v33 = vrot.slane %v2865_v48, 4  ;;  %v2861_v38 = vperm.slane %v2855_v35, %v3290_v28 }
 0x6e9   :  { %v2843_v59 = vsel %vm77_vm0, %v2842_v55, %v2824_v52 }
 0x6ea   :  { %v2871_v11 = vsel %vm77_vm0, %v2870_v33, %v2853_v36  ;;  %v2849_v39 = vperm.slane %v2843_v59, %v3290_v28  ;;  %v2866_v56 = vrot.slane %v2861_v38, 4  ;;  %v2872_v42 = vrot.slane %v2853_v36, 4 }
 0x6eb   :  { %2879 = vrot.lane.b32.xlu0 %v2871_v11, %s3215_s3 }
 0x6ec   :  { %v2867_v37 = vsel %vm77_vm0, %v2866_v56, %v2849_v39  ;;  %v2868_v41 = vrot.slane %v2849_v39, 4  ;;  %v2873_v45 = vsel %vm77_vm0, %v2865_v48, %v2872_v42 }
 0x6ee   :  { %v2869_v61 = vsel %vm77_vm0, %v2861_v38, %v2868_v41 }
 0x6f3   :  { %2875 = vrot.lane.b32.xlu0 %v2869_v61, %s3206_s24 }
 0x6fb   :  { %2883 = vrot.lane.b32.xlu0 %v2873_v45, %s3216_s10 }
 0x75d   :  { %v2880_v4 = vpop.permute.xlu0 %2879 }
 0x765   :  { %v2876_v43 = vpop.permute.xlu0 %2875 }
 0x766   :  { %v2886_v12 = vsel %vm1001_vm1, %v2867_v37, %v2876_v43 }
 0x767   :  { %v2887_v49 = vsel %vm1472_vm4, %v2886_v12, %v2880_v4 }
 0x76d   :  { %v2884_v28 = vpop.permute.xlu0 %2883 }
 0x76e   :  { %v2888_v57 = vsel %vm1474_vm8, %v2887_v49, %v2884_v28 }
 0x76f   :  { %2890 = vst.msk [vmem:[#allocation8 + $0x8] sm:$0xff] %vm1476_vm9, %v2888_v57 }
 0x770   :  { %2903 = dma.vmem_to_hbm [thread:$0]  %s2896_s12, 256, %s2898_s15, [#allocation4], %s3205_s23, %s3205_s23, %s3206_s24  }
 0x771   :  { %3202 = dma.done.wait [#allocation4], 256  }
 0x772   :  { %3203 = vsyncadd [#allocation4], 4294967040 }
 0x773   :  { %2908 = vsyncpa [#allocation3], 1 }
 0x774   :  { %2909 = vsyncpa [#allocation6], 1 }
 0x775   :  { %2910 = vsyncpa [#allocation4], 1 }

</bundles_post_ra>
